<compile_context>
chip_gen: v5e
topology: v5e:2x2
jax: 0.10.0
libtpu: 0.0.40
codegen_flags: <defaults>
</compile_context>

<pallas_src>
import functools

import jax
import jax.numpy as jnp
from jax.experimental import pallas as pl
from jax.experimental.pallas import tpu as pltpu


def _round_up(x, m):
    return ((x + m - 1) // m) * m


def swem_kernel(ids_ref, mask_ref, embed_ref, w1a_ref, w1b_ref, b1_ref,
                w2_ref, b2_ref, out_ref):
    """One batch-block of the SWEM-concat forward pass.

    ids_ref  : (sl, bb, 1)   int32  token ids, seq-major
    mask_ref : (sl, bb, 1)   f32    0/1 validity mask, seq-major
    embed_ref: (vs_p, ed)    f32    zero-padded embedding table (VMEM resident)
    w1a_ref  : (ed, hs_p)    f32    rows of Linear(2*ed,hs) for the max-pooled half (BN folded)
    w1b_ref  : (ed, hs_p)    f32    rows of Linear(2*ed,hs) for the avg-pooled half (BN folded)
    b1_ref   : (1, hs_p)     f32    folded bias
    w2_ref   : (hs_p, nc_p)  f32
    b2_ref   : (1, nc_p)     f32
    out_ref  : (bb, nc_p)    f32    lane-dense (padded) logits
    """
    sl, bb, _ = ids_ref.shape
    vs_p, ed = embed_ref.shape

    embed = embed_ref[...]                                          # (vs_p, ed)
    # Hoisted (broadcasts are not CSE'd if placed inside the loop).
    vocab = jax.lax.broadcasted_iota(jnp.int32, (bb, vs_p), 1)

    def body(s, carry):
        mx, ssum, denom = carry
        ids_s = ids_ref[s]                                          # (bb, 1) int32
        m_s = mask_ref[s]                                           # (bb, 1) f32
        # Masked one-hot gather on the MXU: row b becomes mask[b,s] * E[ids[b,s]].
        # (mask-fill(0) is fused here: masked tokens yield exact zero rows.)
        onehot = jnp.where(vocab == ids_s, m_s, 0.0)                # (bb, vs_p)
        wv_s = jnp.dot(onehot, embed,
                       preferred_element_type=jnp.float32)          # (bb, ed)
        return (jnp.maximum(mx, wv_s), ssum + wv_s, denom + m_s)

    mx0 = jnp.full((bb, ed), -jnp.inf, dtype=jnp.float32)
    ssum0 = jnp.zeros((bb, ed), dtype=jnp.float32)
    den0 = jnp.zeros((bb, 1), dtype=jnp.float32)
    # Small static trip count -> fully unrolled for LLO scheduling visibility.
    mx, ssum, denom = jax.lax.fori_loop(0, sl, body, (mx0, ssum0, den0),
                                        unroll=True)

    # avg-pool: masked sum / valid-token count, reciprocal on the (otherwise idle) EUP.
    avg = ssum * pl.reciprocal(denom, approx=True)                  # (bb, ed)

    # Linear(2*ed -> hs) on concat([max, avg]) == mx @ W1[:ed] + avg @ W1[ed:]
    # (eval-mode BatchNorm already folded into w1/b1 by the wrapper), then ReLU.
    h = (jnp.dot(mx, w1a_ref[...], preferred_element_type=jnp.float32)
         + jnp.dot(avg, w1b_ref[...], preferred_element_type=jnp.float32)
         + b1_ref[...])
    h = jnp.maximum(h, 0.0)

    # Linear(hs -> nc); nc padded to 128 so the store is an unmasked lane-dense vst.
    out_ref[...] = (jnp.dot(h, w2_ref[...], preferred_element_type=jnp.float32)
                    + b2_ref[...])


def swem_forward(x_ids, mask, params, *, block_bs=None):
    bs, sl = x_ids.shape
    embed = params["embed"].astype(jnp.float32)
    vs, ed = embed.shape
    w1, b1 = params["w1"], params["b1"]
    w2, b2 = params["w2"], params["b2"]
    hs = w1.shape[1]
    nc = w2.shape[1]

    # ---- Fold eval-mode BatchNorm1d into the first Linear (exact in eval mode). ----
    eps = 1e-5
    scale = params["gamma"] * jax.lax.rsqrt(params["rvar"] + eps)    # (1, hs)
    w1f = w1 * scale
    b1f = (b1 - params["rmean"]) * scale + params["beta"]

    # ---- Lane-dense zero padding (vocab / hidden / classes -> multiples of 128). ----
    vs_p = _round_up(vs, 128)
    hs_p = _round_up(hs, 128)
    nc_p = _round_up(nc, 128)

    if block_bs is None:
        block_bs = min(128, _round_up(bs, 8))
    bs_p = _round_up(bs, block_bs)

    embed_p = jnp.pad(embed, ((0, vs_p - vs), (0, 0)))
    w1a = jnp.pad(w1f[:ed, :], ((0, 0), (0, hs_p - hs)))             # max half
    w1b = jnp.pad(w1f[ed:, :], ((0, 0), (0, hs_p - hs)))             # avg half
    b1p = jnp.pad(b1f, ((0, 0), (0, hs_p - hs)))
    w2p = jnp.pad(w2, ((0, hs_p - hs), (0, nc_p - nc)))
    b2p = jnp.pad(b2, ((0, 0), (0, nc_p - nc)))

    # ids / mask in seq-major layout: each loop step reads a contiguous (bb, 1) slab.
    # Padded batch rows get mask=1 / id=0 so they stay finite (sliced off below).
    ids_pad = jnp.pad(x_ids.astype(jnp.int32), ((0, bs_p - bs), (0, 0)))
    mask_pad = jnp.pad(mask.astype(jnp.float32), ((0, bs_p - bs), (0, 0)),
                       constant_values=1.0)
    ids_t = jnp.transpose(ids_pad)[:, :, None]                       # (sl, bs_p, 1)
    mask_t = jnp.transpose(mask_pad)[:, :, None]                     # (sl, bs_p, 1)

    def full(shape):
        zeros = (0,) * len(shape)
        return pl.BlockSpec(shape, lambda i: zeros)

    out = pl.pallas_call(
        swem_kernel,
        out_shape=jax.ShapeDtypeStruct((bs_p, nc_p), jnp.float32),
        grid=(bs_p // block_bs,),
        in_specs=[
            pl.BlockSpec((sl, block_bs, 1), lambda i: (0, i, 0)),    # ids (seq-major)
            pl.BlockSpec((sl, block_bs, 1), lambda i: (0, i, 0)),    # mask (seq-major)
            full((vs_p, ed)),                                        # embedding table
            full((ed, hs_p)),                                        # w1 (max half, BN folded)
            full((ed, hs_p)),                                        # w1 (avg half, BN folded)
            full((1, hs_p)),                                         # b1 (folded)
            full((hs_p, nc_p)),                                      # w2
            full((1, nc_p)),                                         # b2
        ],
        out_specs=pl.BlockSpec((block_bs, nc_p), lambda i: (i, 0)),
        compiler_params=pltpu.CompilerParams(
            # batch blocks are independent -> shard across TensorCores (v7x megacore)
            dimension_semantics=("parallel",),
            vmem_limit_bytes=32 * 1024 * 1024),
    )(ids_t, mask_t, embed_p, w1a, w1b, b1p, w2p, b2p)

    return out[:bs, :nc]


def ref_forward(x_ids, mask, params):
    """Pure-JAX reference matching the PyTorch module (eval-mode BatchNorm)."""
    mask = mask.astype(jnp.float32)
    wv = params["embed"][x_ids].astype(jnp.float32)                  # (bs, sl, ed)
    wv = wv * mask[:, :, None]                                       # masked_fill(., 0)
    mx = wv.max(axis=1)
    avg = wv.sum(axis=1) / mask.sum(axis=1, keepdims=True)
    feat = jnp.concatenate([mx, avg], axis=1)
    h = feat @ params["w1"] + params["b1"]
    h = (h - params["rmean"]) * jax.lax.rsqrt(params["rvar"] + 1e-5)
    h = h * params["gamma"] + params["beta"]
    h = jnp.maximum(h, 0.0)
    return h @ params["w2"] + params["b2"]


def make_params(key, vs, ed, hs, nc):
    ks = jax.random.split(key, 6)
    return {
        "embed": jax.random.normal(ks[0], (vs, ed), jnp.float32) * 0.1,
        "w1":    jax.random.normal(ks[1], (2 * ed, hs), jnp.float32) * 0.05,
        "b1":    jax.random.normal(ks[2], (1, hs), jnp.float32) * 0.01,
        "gamma": jnp.ones((1, hs), jnp.float32) * 1.1,
        "beta":  jnp.full((1, hs), 0.05, jnp.float32),
        "rmean": jnp.full((1, hs), 0.02, jnp.float32),
        "rvar":  jnp.ones((1, hs), jnp.float32) * 0.9,
        "w2":    jax.random.normal(ks[3], (hs, nc), jnp.float32) * 0.05,
        "b2":    jax.random.normal(ks[4], (1, nc), jnp.float32) * 0.01,
    }


if __name__ == "__main__":
    # Small, module-consistent shapes.
    bs, sl, ed, hs, nc, vs = 8, 16, 32, 32, 8, 64

    key = jax.random.PRNGKey(0)
    k_ids, k_par = jax.random.split(key)

    x_ids = jax.random.randint(k_ids, (bs, sl), 0, vs, dtype=jnp.int32)
    # Valid-prefix mask with at least one valid token per row.
    lens = (jnp.arange(bs) % sl) + 1                                 # (bs,)
    mask = (jnp.arange(sl)[None, :] < lens[:, None]).astype(jnp.float32)

    params = make_params(k_par, vs, ed, hs, nc)

    fwd = jax.jit(functools.partial(swem_forward, params=params))
    logits = fwd(x_ids, mask)
    jax.block_until_ready(logits)
    assert logits.shape == (bs, nc)
    assert bool(jnp.all(jnp.isfinite(logits)))

    ref = ref_forward(x_ids, mask, params)
    assert bool(jnp.allclose(logits, ref, rtol=1e-2, atol=1e-2)), (
        "max abs diff = %g" % float(jnp.max(jnp.abs(logits - ref))))

    print("KERNEL_OK")
</pallas_src>

<mosaic_0001>
module attributes {stable_mosaic.version = 11 : i64} {
  func.func @swem_kernel(%arg0: i32, %arg1: memref<16x8x1xi32, #tpu.memory_space<vmem>>, %arg2: memref<16x8x1xf32, #tpu.memory_space<vmem>>, %arg3: memref<128x32xf32, #tpu.memory_space<vmem>>, %arg4: memref<32x128xf32, #tpu.memory_space<vmem>>, %arg5: memref<32x128xf32, #tpu.memory_space<vmem>>, %arg6: memref<1x128xf32, #tpu.memory_space<vmem>>, %arg7: memref<128x128xf32, #tpu.memory_space<vmem>>, %arg8: memref<1x128xf32, #tpu.memory_space<vmem>>, %arg9: memref<8x128xf32, #tpu.memory_space<vmem>>) attributes {dimension_semantics = [#tpu.dimension_semantics<parallel>], iteration_bounds = array<i64: 1>, scalar_prefetch = 0 : i64, scratch_operands = 0 : i64, tpu.core_type = #tpu.core_type<tc>, window_params = [{transform_indices = @transform_0, window_bounds = array<i64: 16, 8, 1>}, {transform_indices = @transform_1, window_bounds = array<i64: 16, 8, 1>}, {pipeline_mode = #tpu.pipeline_mode<synchronous>, transform_indices = @transform_2, window_bounds = array<i64: 128, 32>}, {pipeline_mode = #tpu.pipeline_mode<synchronous>, transform_indices = @transform_3, window_bounds = array<i64: 32, 128>}, {pipeline_mode = #tpu.pipeline_mode<synchronous>, transform_indices = @transform_4, window_bounds = array<i64: 32, 128>}, {pipeline_mode = #tpu.pipeline_mode<synchronous>, transform_indices = @transform_5, window_bounds = array<i64: 1, 128>}, {pipeline_mode = #tpu.pipeline_mode<synchronous>, transform_indices = @transform_6, window_bounds = array<i64: 128, 128>}, {pipeline_mode = #tpu.pipeline_mode<synchronous>, transform_indices = @transform_7, window_bounds = array<i64: 1, 128>}, {transform_indices = @transform_8, window_bounds = array<i64: 8, 128>}]} {
    %c0 = arith.constant 0 : index
    %c0_0 = arith.constant 0 : index
    %0 = vector.load %arg3[%c0, %c0_0] : memref<128x32xf32, #tpu.memory_space<vmem>>, vector<128x32xf32>
    %1 = tpu.iota {dimensions = array<i32: 1>} : vector<8x128xi32>
    %cst = arith.constant 0xFF800000 : f32
    %2 = vector.broadcast %cst : f32 to vector<8x32xf32>
    %cst_1 = arith.constant 0.000000e+00 : f32
    %3 = vector.broadcast %cst_1 : f32 to vector<8x32xf32>
    %cst_2 = arith.constant 0.000000e+00 : f32
    %4 = vector.broadcast %cst_2 : f32 to vector<8x1xf32>
    %c0_i32 = arith.constant 0 : i32
    %5 = arith.index_cast %c0_i32 : i32 to index
    %c0_3 = arith.constant 0 : index
    %c0_4 = arith.constant 0 : index
    %6 = vector.load %arg1[%5, %c0_3, %c0_4] : memref<16x8x1xi32, #tpu.memory_space<vmem>>, vector<1x8x1xi32>
    %7 = vector.shape_cast %6 : vector<1x8x1xi32> to vector<8x1xi32>
    %8 = arith.index_cast %c0_i32 : i32 to index
    %c0_5 = arith.constant 0 : index
    %c0_6 = arith.constant 0 : index
    %9 = vector.load %arg2[%8, %c0_5, %c0_6] : memref<16x8x1xf32, #tpu.memory_space<vmem>>, vector<1x8x1xf32>
    %10 = vector.shape_cast %9 : vector<1x8x1xf32> to vector<8x1xf32>
    %11 = vector.broadcast %7 : vector<8x1xi32> to vector<8x128xi32>
    %12 = arith.cmpi eq, %1, %11 : vector<8x128xi32>
    %cst_7 = arith.constant 0.000000e+00 : f32
    %13 = vector.shape_cast %10 : vector<8x1xf32> to vector<8x1xf32>
    %14 = vector.broadcast %13 : vector<8x1xf32> to vector<8x128xf32>
    %15 = vector.broadcast %cst_7 : f32 to vector<8x128xf32>
    %16 = arith.select %12, %14, %15 : vector<8x128xi1>, vector<8x128xf32>
    %cst_8 = arith.constant dense<0.000000e+00> : vector<8x32xf32>
    %17 = tpu.matmul %16, %0, %cst_8 {dimension_numbers = #tpu.dot_dimension_numbers<[1], [0], [0], [1], [0, 0, 1, 1], [], []>} : vector<8x128xf32>, vector<128x32xf32>, vector<8x32xf32> -> vector<8x32xf32>
    %18 = arith.maximumf %2, %17 : vector<8x32xf32>
    %19 = arith.addf %3, %17 : vector<8x32xf32>
    %20 = arith.addf %4, %10 : vector<8x1xf32>
    %c1_i32 = arith.constant 1 : i32
    %21 = arith.index_cast %c1_i32 : i32 to index
    %c0_9 = arith.constant 0 : index
    %c0_10 = arith.constant 0 : index
    %22 = vector.load %arg1[%21, %c0_9, %c0_10] : memref<16x8x1xi32, #tpu.memory_space<vmem>>, vector<1x8x1xi32>
    %23 = vector.shape_cast %22 : vector<1x8x1xi32> to vector<8x1xi32>
    %24 = arith.index_cast %c1_i32 : i32 to index
    %c0_11 = arith.constant 0 : index
    %c0_12 = arith.constant 0 : index
    %25 = vector.load %arg2[%24, %c0_11, %c0_12] : memref<16x8x1xf32, #tpu.memory_space<vmem>>, vector<1x8x1xf32>
    %26 = vector.shape_cast %25 : vector<1x8x1xf32> to vector<8x1xf32>
    %27 = vector.broadcast %23 : vector<8x1xi32> to vector<8x128xi32>
    %28 = arith.cmpi eq, %1, %27 : vector<8x128xi32>
    %cst_13 = arith.constant 0.000000e+00 : f32
    %29 = vector.shape_cast %26 : vector<8x1xf32> to vector<8x1xf32>
    %30 = vector.broadcast %29 : vector<8x1xf32> to vector<8x128xf32>
    %31 = vector.broadcast %cst_13 : f32 to vector<8x128xf32>
    %32 = arith.select %28, %30, %31 : vector<8x128xi1>, vector<8x128xf32>
    %cst_14 = arith.constant dense<0.000000e+00> : vector<8x32xf32>
    %33 = tpu.matmul %32, %0, %cst_14 {dimension_numbers = #tpu.dot_dimension_numbers<[1], [0], [0], [1], [0, 0, 1, 1], [], []>} : vector<8x128xf32>, vector<128x32xf32>, vector<8x32xf32> -> vector<8x32xf32>
    %34 = arith.maximumf %18, %33 : vector<8x32xf32>
    %35 = arith.addf %19, %33 : vector<8x32xf32>
    %36 = arith.addf %20, %26 : vector<8x1xf32>
    %c2_i32 = arith.constant 2 : i32
    %37 = arith.index_cast %c2_i32 : i32 to index
    %c0_15 = arith.constant 0 : index
    %c0_16 = arith.constant 0 : index
    %38 = vector.load %arg1[%37, %c0_15, %c0_16] : memref<16x8x1xi32, #tpu.memory_space<vmem>>, vector<1x8x1xi32>
    %39 = vector.shape_cast %38 : vector<1x8x1xi32> to vector<8x1xi32>
    %40 = arith.index_cast %c2_i32 : i32 to index
    %c0_17 = arith.constant 0 : index
    %c0_18 = arith.constant 0 : index
    %41 = vector.load %arg2[%40, %c0_17, %c0_18] : memref<16x8x1xf32, #tpu.memory_space<vmem>>, vector<1x8x1xf32>
    %42 = vector.shape_cast %41 : vector<1x8x1xf32> to vector<8x1xf32>
    %43 = vector.broadcast %39 : vector<8x1xi32> to vector<8x128xi32>
    %44 = arith.cmpi eq, %1, %43 : vector<8x128xi32>
    %cst_19 = arith.constant 0.000000e+00 : f32
    %45 = vector.shape_cast %42 : vector<8x1xf32> to vector<8x1xf32>
    %46 = vector.broadcast %45 : vector<8x1xf32> to vector<8x128xf32>
    %47 = vector.broadcast %cst_19 : f32 to vector<8x128xf32>
    %48 = arith.select %44, %46, %47 : vector<8x128xi1>, vector<8x128xf32>
    %cst_20 = arith.constant dense<0.000000e+00> : vector<8x32xf32>
    %49 = tpu.matmul %48, %0, %cst_20 {dimension_numbers = #tpu.dot_dimension_numbers<[1], [0], [0], [1], [0, 0, 1, 1], [], []>} : vector<8x128xf32>, vector<128x32xf32>, vector<8x32xf32> -> vector<8x32xf32>
    %50 = arith.maximumf %34, %49 : vector<8x32xf32>
    %51 = arith.addf %35, %49 : vector<8x32xf32>
    %52 = arith.addf %36, %42 : vector<8x1xf32>
    %c3_i32 = arith.constant 3 : i32
    %53 = arith.index_cast %c3_i32 : i32 to index
    %c0_21 = arith.constant 0 : index
    %c0_22 = arith.constant 0 : index
    %54 = vector.load %arg1[%53, %c0_21, %c0_22] : memref<16x8x1xi32, #tpu.memory_space<vmem>>, vector<1x8x1xi32>
    %55 = vector.shape_cast %54 : vector<1x8x1xi32> to vector<8x1xi32>
    %56 = arith.index_cast %c3_i32 : i32 to index
    %c0_23 = arith.constant 0 : index
    %c0_24 = arith.constant 0 : index
    %57 = vector.load %arg2[%56, %c0_23, %c0_24] : memref<16x8x1xf32, #tpu.memory_space<vmem>>, vector<1x8x1xf32>
    %58 = vector.shape_cast %57 : vector<1x8x1xf32> to vector<8x1xf32>
    %59 = vector.broadcast %55 : vector<8x1xi32> to vector<8x128xi32>
    %60 = arith.cmpi eq, %1, %59 : vector<8x128xi32>
    %cst_25 = arith.constant 0.000000e+00 : f32
    %61 = vector.shape_cast %58 : vector<8x1xf32> to vector<8x1xf32>
    %62 = vector.broadcast %61 : vector<8x1xf32> to vector<8x128xf32>
    %63 = vector.broadcast %cst_25 : f32 to vector<8x128xf32>
    %64 = arith.select %60, %62, %63 : vector<8x128xi1>, vector<8x128xf32>
    %cst_26 = arith.constant dense<0.000000e+00> : vector<8x32xf32>
    %65 = tpu.matmul %64, %0, %cst_26 {dimension_numbers = #tpu.dot_dimension_numbers<[1], [0], [0], [1], [0, 0, 1, 1], [], []>} : vector<8x128xf32>, vector<128x32xf32>, vector<8x32xf32> -> vector<8x32xf32>
    %66 = arith.maximumf %50, %65 : vector<8x32xf32>
    %67 = arith.addf %51, %65 : vector<8x32xf32>
    %68 = arith.addf %52, %58 : vector<8x1xf32>
    %c4_i32 = arith.constant 4 : i32
    %69 = arith.index_cast %c4_i32 : i32 to index
    %c0_27 = arith.constant 0 : index
    %c0_28 = arith.constant 0 : index
    %70 = vector.load %arg1[%69, %c0_27, %c0_28] : memref<16x8x1xi32, #tpu.memory_space<vmem>>, vector<1x8x1xi32>
    %71 = vector.shape_cast %70 : vector<1x8x1xi32> to vector<8x1xi32>
    %72 = arith.index_cast %c4_i32 : i32 to index
    %c0_29 = arith.constant 0 : index
    %c0_30 = arith.constant 0 : index
    %73 = vector.load %arg2[%72, %c0_29, %c0_30] : memref<16x8x1xf32, #tpu.memory_space<vmem>>, vector<1x8x1xf32>
    %74 = vector.shape_cast %73 : vector<1x8x1xf32> to vector<8x1xf32>
    %75 = vector.broadcast %71 : vector<8x1xi32> to vector<8x128xi32>
    %76 = arith.cmpi eq, %1, %75 : vector<8x128xi32>
    %cst_31 = arith.constant 0.000000e+00 : f32
    %77 = vector.shape_cast %74 : vector<8x1xf32> to vector<8x1xf32>
    %78 = vector.broadcast %77 : vector<8x1xf32> to vector<8x128xf32>
    %79 = vector.broadcast %cst_31 : f32 to vector<8x128xf32>
    %80 = arith.select %76, %78, %79 : vector<8x128xi1>, vector<8x128xf32>
    %cst_32 = arith.constant dense<0.000000e+00> : vector<8x32xf32>
    %81 = tpu.matmul %80, %0, %cst_32 {dimension_numbers = #tpu.dot_dimension_numbers<[1], [0], [0], [1], [0, 0, 1, 1], [], []>} : vector<8x128xf32>, vector<128x32xf32>, vector<8x32xf32> -> vector<8x32xf32>
    %82 = arith.maximumf %66, %81 : vector<8x32xf32>
    %83 = arith.addf %67, %81 : vector<8x32xf32>
    %84 = arith.addf %68, %74 : vector<8x1xf32>
    %c5_i32 = arith.constant 5 : i32
    %85 = arith.index_cast %c5_i32 : i32 to index
    %c0_33 = arith.constant 0 : index
    %c0_34 = arith.constant 0 : index
    %86 = vector.load %arg1[%85, %c0_33, %c0_34] : memref<16x8x1xi32, #tpu.memory_space<vmem>>, vector<1x8x1xi32>
    %87 = vector.shape_cast %86 : vector<1x8x1xi32> to vector<8x1xi32>
    %88 = arith.index_cast %c5_i32 : i32 to index
    %c0_35 = arith.constant 0 : index
    %c0_36 = arith.constant 0 : index
    %89 = vector.load %arg2[%88, %c0_35, %c0_36] : memref<16x8x1xf32, #tpu.memory_space<vmem>>, vector<1x8x1xf32>
    %90 = vector.shape_cast %89 : vector<1x8x1xf32> to vector<8x1xf32>
    %91 = vector.broadcast %87 : vector<8x1xi32> to vector<8x128xi32>
    %92 = arith.cmpi eq, %1, %91 : vector<8x128xi32>
    %cst_37 = arith.constant 0.000000e+00 : f32
    %93 = vector.shape_cast %90 : vector<8x1xf32> to vector<8x1xf32>
    %94 = vector.broadcast %93 : vector<8x1xf32> to vector<8x128xf32>
    %95 = vector.broadcast %cst_37 : f32 to vector<8x128xf32>
    %96 = arith.select %92, %94, %95 : vector<8x128xi1>, vector<8x128xf32>
    %cst_38 = arith.constant dense<0.000000e+00> : vector<8x32xf32>
    %97 = tpu.matmul %96, %0, %cst_38 {dimension_numbers = #tpu.dot_dimension_numbers<[1], [0], [0], [1], [0, 0, 1, 1], [], []>} : vector<8x128xf32>, vector<128x32xf32>, vector<8x32xf32> -> vector<8x32xf32>
    %98 = arith.maximumf %82, %97 : vector<8x32xf32>
    %99 = arith.addf %83, %97 : vector<8x32xf32>
    %100 = arith.addf %84, %90 : vector<8x1xf32>
    %c6_i32 = arith.constant 6 : i32
    %101 = arith.index_cast %c6_i32 : i32 to index
    %c0_39 = arith.constant 0 : index
    %c0_40 = arith.constant 0 : index
    %102 = vector.load %arg1[%101, %c0_39, %c0_40] : memref<16x8x1xi32, #tpu.memory_space<vmem>>, vector<1x8x1xi32>
    %103 = vector.shape_cast %102 : vector<1x8x1xi32> to vector<8x1xi32>
    %104 = arith.index_cast %c6_i32 : i32 to index
    %c0_41 = arith.constant 0 : index
    %c0_42 = arith.constant 0 : index
    %105 = vector.load %arg2[%104, %c0_41, %c0_42] : memref<16x8x1xf32, #tpu.memory_space<vmem>>, vector<1x8x1xf32>
    %106 = vector.shape_cast %105 : vector<1x8x1xf32> to vector<8x1xf32>
    %107 = vector.broadcast %103 : vector<8x1xi32> to vector<8x128xi32>
    %108 = arith.cmpi eq, %1, %107 : vector<8x128xi32>
    %cst_43 = arith.constant 0.000000e+00 : f32
    %109 = vector.shape_cast %106 : vector<8x1xf32> to vector<8x1xf32>
    %110 = vector.broadcast %109 : vector<8x1xf32> to vector<8x128xf32>
    %111 = vector.broadcast %cst_43 : f32 to vector<8x128xf32>
    %112 = arith.select %108, %110, %111 : vector<8x128xi1>, vector<8x128xf32>
    %cst_44 = arith.constant dense<0.000000e+00> : vector<8x32xf32>
    %113 = tpu.matmul %112, %0, %cst_44 {dimension_numbers = #tpu.dot_dimension_numbers<[1], [0], [0], [1], [0, 0, 1, 1], [], []>} : vector<8x128xf32>, vector<128x32xf32>, vector<8x32xf32> -> vector<8x32xf32>
    %114 = arith.maximumf %98, %113 : vector<8x32xf32>
    %115 = arith.addf %99, %113 : vector<8x32xf32>
    %116 = arith.addf %100, %106 : vector<8x1xf32>
    %c7_i32 = arith.constant 7 : i32
    %117 = arith.index_cast %c7_i32 : i32 to index
    %c0_45 = arith.constant 0 : index
    %c0_46 = arith.constant 0 : index
    %118 = vector.load %arg1[%117, %c0_45, %c0_46] : memref<16x8x1xi32, #tpu.memory_space<vmem>>, vector<1x8x1xi32>
    %119 = vector.shape_cast %118 : vector<1x8x1xi32> to vector<8x1xi32>
    %120 = arith.index_cast %c7_i32 : i32 to index
    %c0_47 = arith.constant 0 : index
    %c0_48 = arith.constant 0 : index
    %121 = vector.load %arg2[%120, %c0_47, %c0_48] : memref<16x8x1xf32, #tpu.memory_space<vmem>>, vector<1x8x1xf32>
    %122 = vector.shape_cast %121 : vector<1x8x1xf32> to vector<8x1xf32>
    %123 = vector.broadcast %119 : vector<8x1xi32> to vector<8x128xi32>
    %124 = arith.cmpi eq, %1, %123 : vector<8x128xi32>
    %cst_49 = arith.constant 0.000000e+00 : f32
    %125 = vector.shape_cast %122 : vector<8x1xf32> to vector<8x1xf32>
    %126 = vector.broadcast %125 : vector<8x1xf32> to vector<8x128xf32>
    %127 = vector.broadcast %cst_49 : f32 to vector<8x128xf32>
    %128 = arith.select %124, %126, %127 : vector<8x128xi1>, vector<8x128xf32>
    %cst_50 = arith.constant dense<0.000000e+00> : vector<8x32xf32>
    %129 = tpu.matmul %128, %0, %cst_50 {dimension_numbers = #tpu.dot_dimension_numbers<[1], [0], [0], [1], [0, 0, 1, 1], [], []>} : vector<8x128xf32>, vector<128x32xf32>, vector<8x32xf32> -> vector<8x32xf32>
    %130 = arith.maximumf %114, %129 : vector<8x32xf32>
    %131 = arith.addf %115, %129 : vector<8x32xf32>
    %132 = arith.addf %116, %122 : vector<8x1xf32>
    %c8_i32 = arith.constant 8 : i32
    %133 = arith.index_cast %c8_i32 : i32 to index
    %c0_51 = arith.constant 0 : index
    %c0_52 = arith.constant 0 : index
    %134 = vector.load %arg1[%133, %c0_51, %c0_52] : memref<16x8x1xi32, #tpu.memory_space<vmem>>, vector<1x8x1xi32>
    %135 = vector.shape_cast %134 : vector<1x8x1xi32> to vector<8x1xi32>
    %136 = arith.index_cast %c8_i32 : i32 to index
    %c0_53 = arith.constant 0 : index
    %c0_54 = arith.constant 0 : index
    %137 = vector.load %arg2[%136, %c0_53, %c0_54] : memref<16x8x1xf32, #tpu.memory_space<vmem>>, vector<1x8x1xf32>
    %138 = vector.shape_cast %137 : vector<1x8x1xf32> to vector<8x1xf32>
    %139 = vector.broadcast %135 : vector<8x1xi32> to vector<8x128xi32>
    %140 = arith.cmpi eq, %1, %139 : vector<8x128xi32>
    %cst_55 = arith.constant 0.000000e+00 : f32
    %141 = vector.shape_cast %138 : vector<8x1xf32> to vector<8x1xf32>
    %142 = vector.broadcast %141 : vector<8x1xf32> to vector<8x128xf32>
    %143 = vector.broadcast %cst_55 : f32 to vector<8x128xf32>
    %144 = arith.select %140, %142, %143 : vector<8x128xi1>, vector<8x128xf32>
    %cst_56 = arith.constant dense<0.000000e+00> : vector<8x32xf32>
    %145 = tpu.matmul %144, %0, %cst_56 {dimension_numbers = #tpu.dot_dimension_numbers<[1], [0], [0], [1], [0, 0, 1, 1], [], []>} : vector<8x128xf32>, vector<128x32xf32>, vector<8x32xf32> -> vector<8x32xf32>
    %146 = arith.maximumf %130, %145 : vector<8x32xf32>
    %147 = arith.addf %131, %145 : vector<8x32xf32>
    %148 = arith.addf %132, %138 : vector<8x1xf32>
    %c9_i32 = arith.constant 9 : i32
    %149 = arith.index_cast %c9_i32 : i32 to index
    %c0_57 = arith.constant 0 : index
    %c0_58 = arith.constant 0 : index
    %150 = vector.load %arg1[%149, %c0_57, %c0_58] : memref<16x8x1xi32, #tpu.memory_space<vmem>>, vector<1x8x1xi32>
    %151 = vector.shape_cast %150 : vector<1x8x1xi32> to vector<8x1xi32>
    %152 = arith.index_cast %c9_i32 : i32 to index
    %c0_59 = arith.constant 0 : index
    %c0_60 = arith.constant 0 : index
    %153 = vector.load %arg2[%152, %c0_59, %c0_60] : memref<16x8x1xf32, #tpu.memory_space<vmem>>, vector<1x8x1xf32>
    %154 = vector.shape_cast %153 : vector<1x8x1xf32> to vector<8x1xf32>
    %155 = vector.broadcast %151 : vector<8x1xi32> to vector<8x128xi32>
    %156 = arith.cmpi eq, %1, %155 : vector<8x128xi32>
    %cst_61 = arith.constant 0.000000e+00 : f32
    %157 = vector.shape_cast %154 : vector<8x1xf32> to vector<8x1xf32>
    %158 = vector.broadcast %157 : vector<8x1xf32> to vector<8x128xf32>
    %159 = vector.broadcast %cst_61 : f32 to vector<8x128xf32>
    %160 = arith.select %156, %158, %159 : vector<8x128xi1>, vector<8x128xf32>
    %cst_62 = arith.constant dense<0.000000e+00> : vector<8x32xf32>
    %161 = tpu.matmul %160, %0, %cst_62 {dimension_numbers = #tpu.dot_dimension_numbers<[1], [0], [0], [1], [0, 0, 1, 1], [], []>} : vector<8x128xf32>, vector<128x32xf32>, vector<8x32xf32> -> vector<8x32xf32>
    %162 = arith.maximumf %146, %161 : vector<8x32xf32>
    %163 = arith.addf %147, %161 : vector<8x32xf32>
    %164 = arith.addf %148, %154 : vector<8x1xf32>
    %c10_i32 = arith.constant 10 : i32
    %165 = arith.index_cast %c10_i32 : i32 to index
    %c0_63 = arith.constant 0 : index
    %c0_64 = arith.constant 0 : index
    %166 = vector.load %arg1[%165, %c0_63, %c0_64] : memref<16x8x1xi32, #tpu.memory_space<vmem>>, vector<1x8x1xi32>
    %167 = vector.shape_cast %166 : vector<1x8x1xi32> to vector<8x1xi32>
    %168 = arith.index_cast %c10_i32 : i32 to index
    %c0_65 = arith.constant 0 : index
    %c0_66 = arith.constant 0 : index
    %169 = vector.load %arg2[%168, %c0_65, %c0_66] : memref<16x8x1xf32, #tpu.memory_space<vmem>>, vector<1x8x1xf32>
    %170 = vector.shape_cast %169 : vector<1x8x1xf32> to vector<8x1xf32>
    %171 = vector.broadcast %167 : vector<8x1xi32> to vector<8x128xi32>
    %172 = arith.cmpi eq, %1, %171 : vector<8x128xi32>
    %cst_67 = arith.constant 0.000000e+00 : f32
    %173 = vector.shape_cast %170 : vector<8x1xf32> to vector<8x1xf32>
    %174 = vector.broadcast %173 : vector<8x1xf32> to vector<8x128xf32>
    %175 = vector.broadcast %cst_67 : f32 to vector<8x128xf32>
    %176 = arith.select %172, %174, %175 : vector<8x128xi1>, vector<8x128xf32>
    %cst_68 = arith.constant dense<0.000000e+00> : vector<8x32xf32>
    %177 = tpu.matmul %176, %0, %cst_68 {dimension_numbers = #tpu.dot_dimension_numbers<[1], [0], [0], [1], [0, 0, 1, 1], [], []>} : vector<8x128xf32>, vector<128x32xf32>, vector<8x32xf32> -> vector<8x32xf32>
    %178 = arith.maximumf %162, %177 : vector<8x32xf32>
    %179 = arith.addf %163, %177 : vector<8x32xf32>
    %180 = arith.addf %164, %170 : vector<8x1xf32>
    %c11_i32 = arith.constant 11 : i32
    %181 = arith.index_cast %c11_i32 : i32 to index
    %c0_69 = arith.constant 0 : index
    %c0_70 = arith.constant 0 : index
    %182 = vector.load %arg1[%181, %c0_69, %c0_70] : memref<16x8x1xi32, #tpu.memory_space<vmem>>, vector<1x8x1xi32>
    %183 = vector.shape_cast %182 : vector<1x8x1xi32> to vector<8x1xi32>
    %184 = arith.index_cast %c11_i32 : i32 to index
    %c0_71 = arith.constant 0 : index
    %c0_72 = arith.constant 0 : index
    %185 = vector.load %arg2[%184, %c0_71, %c0_72] : memref<16x8x1xf32, #tpu.memory_space<vmem>>, vector<1x8x1xf32>
    %186 = vector.shape_cast %185 : vector<1x8x1xf32> to vector<8x1xf32>
    %187 = vector.broadcast %183 : vector<8x1xi32> to vector<8x128xi32>
    %188 = arith.cmpi eq, %1, %187 : vector<8x128xi32>
    %cst_73 = arith.constant 0.000000e+00 : f32
    %189 = vector.shape_cast %186 : vector<8x1xf32> to vector<8x1xf32>
    %190 = vector.broadcast %189 : vector<8x1xf32> to vector<8x128xf32>
    %191 = vector.broadcast %cst_73 : f32 to vector<8x128xf32>
    %192 = arith.select %188, %190, %191 : vector<8x128xi1>, vector<8x128xf32>
    %cst_74 = arith.constant dense<0.000000e+00> : vector<8x32xf32>
    %193 = tpu.matmul %192, %0, %cst_74 {dimension_numbers = #tpu.dot_dimension_numbers<[1], [0], [0], [1], [0, 0, 1, 1], [], []>} : vector<8x128xf32>, vector<128x32xf32>, vector<8x32xf32> -> vector<8x32xf32>
    %194 = arith.maximumf %178, %193 : vector<8x32xf32>
    %195 = arith.addf %179, %193 : vector<8x32xf32>
    %196 = arith.addf %180, %186 : vector<8x1xf32>
    %c12_i32 = arith.constant 12 : i32
    %197 = arith.index_cast %c12_i32 : i32 to index
    %c0_75 = arith.constant 0 : index
    %c0_76 = arith.constant 0 : index
    %198 = vector.load %arg1[%197, %c0_75, %c0_76] : memref<16x8x1xi32, #tpu.memory_space<vmem>>, vector<1x8x1xi32>
    %199 = vector.shape_cast %198 : vector<1x8x1xi32> to vector<8x1xi32>
    %200 = arith.index_cast %c12_i32 : i32 to index
    %c0_77 = arith.constant 0 : index
    %c0_78 = arith.constant 0 : index
    %201 = vector.load %arg2[%200, %c0_77, %c0_78] : memref<16x8x1xf32, #tpu.memory_space<vmem>>, vector<1x8x1xf32>
    %202 = vector.shape_cast %201 : vector<1x8x1xf32> to vector<8x1xf32>
    %203 = vector.broadcast %199 : vector<8x1xi32> to vector<8x128xi32>
    %204 = arith.cmpi eq, %1, %203 : vector<8x128xi32>
    %cst_79 = arith.constant 0.000000e+00 : f32
    %205 = vector.shape_cast %202 : vector<8x1xf32> to vector<8x1xf32>
    %206 = vector.broadcast %205 : vector<8x1xf32> to vector<8x128xf32>
    %207 = vector.broadcast %cst_79 : f32 to vector<8x128xf32>
    %208 = arith.select %204, %206, %207 : vector<8x128xi1>, vector<8x128xf32>
    %cst_80 = arith.constant dense<0.000000e+00> : vector<8x32xf32>
    %209 = tpu.matmul %208, %0, %cst_80 {dimension_numbers = #tpu.dot_dimension_numbers<[1], [0], [0], [1], [0, 0, 1, 1], [], []>} : vector<8x128xf32>, vector<128x32xf32>, vector<8x32xf32> -> vector<8x32xf32>
    %210 = arith.maximumf %194, %209 : vector<8x32xf32>
    %211 = arith.addf %195, %209 : vector<8x32xf32>
    %212 = arith.addf %196, %202 : vector<8x1xf32>
    %c13_i32 = arith.constant 13 : i32
    %213 = arith.index_cast %c13_i32 : i32 to index
    %c0_81 = arith.constant 0 : index
    %c0_82 = arith.constant 0 : index
    %214 = vector.load %arg1[%213, %c0_81, %c0_82] : memref<16x8x1xi32, #tpu.memory_space<vmem>>, vector<1x8x1xi32>
    %215 = vector.shape_cast %214 : vector<1x8x1xi32> to vector<8x1xi32>
    %216 = arith.index_cast %c13_i32 : i32 to index
    %c0_83 = arith.constant 0 : index
    %c0_84 = arith.constant 0 : index
    %217 = vector.load %arg2[%216, %c0_83, %c0_84] : memref<16x8x1xf32, #tpu.memory_space<vmem>>, vector<1x8x1xf32>
    %218 = vector.shape_cast %217 : vector<1x8x1xf32> to vector<8x1xf32>
    %219 = vector.broadcast %215 : vector<8x1xi32> to vector<8x128xi32>
    %220 = arith.cmpi eq, %1, %219 : vector<8x128xi32>
    %cst_85 = arith.constant 0.000000e+00 : f32
    %221 = vector.shape_cast %218 : vector<8x1xf32> to vector<8x1xf32>
    %222 = vector.broadcast %221 : vector<8x1xf32> to vector<8x128xf32>
    %223 = vector.broadcast %cst_85 : f32 to vector<8x128xf32>
    %224 = arith.select %220, %222, %223 : vector<8x128xi1>, vector<8x128xf32>
    %cst_86 = arith.constant dense<0.000000e+00> : vector<8x32xf32>
    %225 = tpu.matmul %224, %0, %cst_86 {dimension_numbers = #tpu.dot_dimension_numbers<[1], [0], [0], [1], [0, 0, 1, 1], [], []>} : vector<8x128xf32>, vector<128x32xf32>, vector<8x32xf32> -> vector<8x32xf32>
    %226 = arith.maximumf %210, %225 : vector<8x32xf32>
    %227 = arith.addf %211, %225 : vector<8x32xf32>
    %228 = arith.addf %212, %218 : vector<8x1xf32>
    %c14_i32 = arith.constant 14 : i32
    %229 = arith.index_cast %c14_i32 : i32 to index
    %c0_87 = arith.constant 0 : index
    %c0_88 = arith.constant 0 : index
    %230 = vector.load %arg1[%229, %c0_87, %c0_88] : memref<16x8x1xi32, #tpu.memory_space<vmem>>, vector<1x8x1xi32>
    %231 = vector.shape_cast %230 : vector<1x8x1xi32> to vector<8x1xi32>
    %232 = arith.index_cast %c14_i32 : i32 to index
    %c0_89 = arith.constant 0 : index
    %c0_90 = arith.constant 0 : index
    %233 = vector.load %arg2[%232, %c0_89, %c0_90] : memref<16x8x1xf32, #tpu.memory_space<vmem>>, vector<1x8x1xf32>
    %234 = vector.shape_cast %233 : vector<1x8x1xf32> to vector<8x1xf32>
    %235 = vector.broadcast %231 : vector<8x1xi32> to vector<8x128xi32>
    %236 = arith.cmpi eq, %1, %235 : vector<8x128xi32>
    %cst_91 = arith.constant 0.000000e+00 : f32
    %237 = vector.shape_cast %234 : vector<8x1xf32> to vector<8x1xf32>
    %238 = vector.broadcast %237 : vector<8x1xf32> to vector<8x128xf32>
    %239 = vector.broadcast %cst_91 : f32 to vector<8x128xf32>
    %240 = arith.select %236, %238, %239 : vector<8x128xi1>, vector<8x128xf32>
    %cst_92 = arith.constant dense<0.000000e+00> : vector<8x32xf32>
    %241 = tpu.matmul %240, %0, %cst_92 {dimension_numbers = #tpu.dot_dimension_numbers<[1], [0], [0], [1], [0, 0, 1, 1], [], []>} : vector<8x128xf32>, vector<128x32xf32>, vector<8x32xf32> -> vector<8x32xf32>
    %242 = arith.maximumf %226, %241 : vector<8x32xf32>
    %243 = arith.addf %227, %241 : vector<8x32xf32>
    %244 = arith.addf %228, %234 : vector<8x1xf32>
    %c15_i32 = arith.constant 15 : i32
    %245 = arith.index_cast %c15_i32 : i32 to index
    %c0_93 = arith.constant 0 : index
    %c0_94 = arith.constant 0 : index
    %246 = vector.load %arg1[%245, %c0_93, %c0_94] : memref<16x8x1xi32, #tpu.memory_space<vmem>>, vector<1x8x1xi32>
    %247 = vector.shape_cast %246 : vector<1x8x1xi32> to vector<8x1xi32>
    %248 = arith.index_cast %c15_i32 : i32 to index
    %c0_95 = arith.constant 0 : index
    %c0_96 = arith.constant 0 : index
    %249 = vector.load %arg2[%248, %c0_95, %c0_96] : memref<16x8x1xf32, #tpu.memory_space<vmem>>, vector<1x8x1xf32>
    %250 = vector.shape_cast %249 : vector<1x8x1xf32> to vector<8x1xf32>
    %251 = vector.broadcast %247 : vector<8x1xi32> to vector<8x128xi32>
    %252 = arith.cmpi eq, %1, %251 : vector<8x128xi32>
    %cst_97 = arith.constant 0.000000e+00 : f32
    %253 = vector.shape_cast %250 : vector<8x1xf32> to vector<8x1xf32>
    %254 = vector.broadcast %253 : vector<8x1xf32> to vector<8x128xf32>
    %255 = vector.broadcast %cst_97 : f32 to vector<8x128xf32>
    %256 = arith.select %252, %254, %255 : vector<8x128xi1>, vector<8x128xf32>
    %cst_98 = arith.constant dense<0.000000e+00> : vector<8x32xf32>
    %257 = tpu.matmul %256, %0, %cst_98 {dimension_numbers = #tpu.dot_dimension_numbers<[1], [0], [0], [1], [0, 0, 1, 1], [], []>} : vector<8x128xf32>, vector<128x32xf32>, vector<8x32xf32> -> vector<8x32xf32>
    %258 = arith.maximumf %242, %257 : vector<8x32xf32>
    %259 = arith.addf %243, %257 : vector<8x32xf32>
    %260 = arith.addf %244, %250 : vector<8x1xf32>
    %c16_i32 = arith.constant 16 : i32
    %261 = tpu.reciprocal %260 {approx = true} : vector<8x1xf32> -> vector<8x1xf32>
    %262 = vector.broadcast %261 : vector<8x1xf32> to vector<8x32xf32>
    %263 = arith.mulf %259, %262 : vector<8x32xf32>
    %c0_99 = arith.constant 0 : index
    %c0_100 = arith.constant 0 : index
    %264 = vector.load %arg4[%c0_99, %c0_100] : memref<32x128xf32, #tpu.memory_space<vmem>>, vector<32x128xf32>
    %cst_101 = arith.constant dense<0.000000e+00> : vector<8x128xf32>
    %265 = tpu.matmul %258, %264, %cst_101 {dimension_numbers = #tpu.dot_dimension_numbers<[1], [0], [0], [1], [0, 0, 1, 1], [], []>} : vector<8x32xf32>, vector<32x128xf32>, vector<8x128xf32> -> vector<8x128xf32>
    %c0_102 = arith.constant 0 : index
    %c0_103 = arith.constant 0 : index
    %266 = vector.load %arg5[%c0_102, %c0_103] : memref<32x128xf32, #tpu.memory_space<vmem>>, vector<32x128xf32>
    %cst_104 = arith.constant dense<0.000000e+00> : vector<8x128xf32>
    %267 = tpu.matmul %263, %266, %cst_104 {dimension_numbers = #tpu.dot_dimension_numbers<[1], [0], [0], [1], [0, 0, 1, 1], [], []>} : vector<8x32xf32>, vector<32x128xf32>, vector<8x128xf32> -> vector<8x128xf32>
    %268 = arith.addf %265, %267 : vector<8x128xf32>
    %c0_105 = arith.constant 0 : index
    %c0_106 = arith.constant 0 : index
    %269 = vector.load %arg6[%c0_105, %c0_106] : memref<1x128xf32, #tpu.memory_space<vmem>>, vector<1x128xf32>
    %270 = vector.broadcast %269 : vector<1x128xf32> to vector<8x128xf32>
    %271 = arith.addf %268, %270 : vector<8x128xf32>
    %cst_107 = arith.constant 0.000000e+00 : f32
    %272 = vector.broadcast %cst_107 : f32 to vector<8x128xf32>
    %273 = arith.maximumf %271, %272 : vector<8x128xf32>
    %c0_108 = arith.constant 0 : index
    %c0_109 = arith.constant 0 : index
    %274 = vector.load %arg7[%c0_108, %c0_109] : memref<128x128xf32, #tpu.memory_space<vmem>>, vector<128x128xf32>
    %cst_110 = arith.constant dense<0.000000e+00> : vector<8x128xf32>
    %275 = tpu.matmul %273, %274, %cst_110 {dimension_numbers = #tpu.dot_dimension_numbers<[1], [0], [0], [1], [0, 0, 1, 1], [], []>} : vector<8x128xf32>, vector<128x128xf32>, vector<8x128xf32> -> vector<8x128xf32>
    %c0_111 = arith.constant 0 : index
    %c0_112 = arith.constant 0 : index
    %276 = vector.load %arg8[%c0_111, %c0_112] : memref<1x128xf32, #tpu.memory_space<vmem>>, vector<1x128xf32>
    %277 = vector.broadcast %276 : vector<1x128xf32> to vector<8x128xf32>
    %278 = arith.addf %275, %277 : vector<8x128xf32>
    %c0_113 = arith.constant 0 : index
    %c0_114 = arith.constant 0 : index
    %279 = vector.load %arg9[%c0_113, %c0_114] : memref<8x128xf32, #tpu.memory_space<vmem>>, vector<8x128xf32>
    tpu.vector_store %arg9[%c0_113, %c0_114], %278 {strides = array<i32>} : memref<8x128xf32, #tpu.memory_space<vmem>>, vector<8x128xf32>,
    return
  }
  func.func @transform_0(%arg0: i32) -> (i32, i32, i32) {
    %c0_i32 = arith.constant 0 : i32
    %c0_i32_0 = arith.constant 0 : i32
    %c0_i32_1 = arith.constant 0 : i32
    return %c0_i32, %arg0, %c0_i32_0 : i32, i32, i32
  }
  func.func @transform_1(%arg0: i32) -> (i32, i32, i32) {
    %c0_i32 = arith.constant 0 : i32
    %c0_i32_0 = arith.constant 0 : i32
    %c0_i32_1 = arith.constant 0 : i32
    return %c0_i32, %arg0, %c0_i32_0 : i32, i32, i32
  }
  func.func @transform_2(%arg0: i32) -> (i32, i32) {
    %c0_i32 = arith.constant 0 : i32
    %c0_i32_0 = arith.constant 0 : i32
    %c0_i32_1 = arith.constant 0 : i32
    return %c0_i32, %c0_i32_0 : i32, i32
  }
  func.func @transform_3(%arg0: i32) -> (i32, i32) {
    %c0_i32 = arith.constant 0 : i32
    %c0_i32_0 = arith.constant 0 : i32
    %c0_i32_1 = arith.constant 0 : i32
    return %c0_i32, %c0_i32_0 : i32, i32
  }
  func.func @transform_4(%arg0: i32) -> (i32, i32) {
    %c0_i32 = arith.constant 0 : i32
    %c0_i32_0 = arith.constant 0 : i32
    %c0_i32_1 = arith.constant 0 : i32
    return %c0_i32, %c0_i32_0 : i32, i32
  }
  func.func @transform_5(%arg0: i32) -> (i32, i32) {
    %c0_i32 = arith.constant 0 : i32
    %c0_i32_0 = arith.constant 0 : i32
    %c0_i32_1 = arith.constant 0 : i32
    return %c0_i32, %c0_i32_0 : i32, i32
  }
  func.func @transform_6(%arg0: i32) -> (i32, i32) {
    %c0_i32 = arith.constant 0 : i32
    %c0_i32_0 = arith.constant 0 : i32
    %c0_i32_1 = arith.constant 0 : i32
    return %c0_i32, %c0_i32_0 : i32, i32
  }
  func.func @transform_7(%arg0: i32) -> (i32, i32) {
    %c0_i32 = arith.constant 0 : i32
    %c0_i32_0 = arith.constant 0 : i32
    %c0_i32_1 = arith.constant 0 : i32
    return %c0_i32, %c0_i32_0 : i32, i32
  }
  func.func @transform_8(%arg0: i32) -> (i32, i32) {
    %c0_i32 = arith.constant 0 : i32
    %c0_i32_0 = arith.constant 0 : i32
    return %arg0, %c0_i32 : i32, i32
  }
}

</mosaic_0001>

<bundles_post_ra>
// kernel: swem_forward.1
= control target key start
LH: loop header
LB: loop body
LE: loop exit
PB: predicated region body
PF: predicated region fallthrough
CT: control target
= control target key end

     0   :  { %13 = vsyncpa [#allocation3], 0  ;;  %s1499_s0 = inlined_call_operand.vmem [shape: s32[16,8,1], index: 0, kind: input, shape index: {}]   ;;  %s1500_s1 = inlined_call_operand.vmem [shape: f32[16,8,1], index: 1, kind: input, shape index: {}]   ;;  %s1501_s2 = inlined_call_operand.vmem [shape: f32[128,32], index: 2, kind: input, shape index: {}]   ;;  %s1502_s3 = inlined_call_operand.hbm [shape: f32[32,128], index: 3, kind: input, shape index: {}]   ;;  %s1503_s4 = inlined_call_operand.hbm [shape: f32[32,128], index: 4, kind: input, shape index: {}]   ;;  %s1504_s5 = inlined_call_operand.vmem [shape: f32[1,128], index: 5, kind: input, shape index: {}]   ;;  %s1505_s6 = inlined_call_operand.vmem [shape: f32[128,128], index: 6, kind: input, shape index: {}]   ;;  %s1506_s7 = inlined_call_operand.vmem [shape: f32[1,128], index: 7, kind: input, shape index: {}]   ;;  %s1507_s8 = inlined_call_operand.hbm [shape: f32[8,128], index: 8, kind: output, shape index: {}]  }
   0x1   :  { %14 = vsyncpa [#allocation6], 0 }
   0x2   :  { %15 = vsyncpa [#allocation4], 0  ;;  %s26_s29 = sshll.u32 %s1502_s3, 4  ;;  %s935_s30 = smov [#allocation2]   ;;  %s27_s29 = int_to_ptr.hbm [resolvable:$true] %s26_s29 }
   0x3   :  { %s28_s9 = sshll.u32 %s935_s30, 4  ;;  %s39_s12 = sshll.u32 %s1503_s4, 4  ;;  %s29_s9 = int_to_ptr.vmem [resolvable:$true] %s28_s9  ;;  %s40_s12 = int_to_ptr.hbm [resolvable:$true] %s39_s12 }
   0x4   :  { %s936_s13 = smov 128   ;;  %s937_s14 = smov 8  }
   0x5   :  { %34 = dma.hbm_to_vmem [thread:$0]  %s27_s29, 512, %s29_s9, [#allocation3], %s936_s13, %s936_s13, %s937_s14  }
   0x6   :  { %s938_s15 = smov [#allocation5]  }
   0x7   :  { %s41_s16 = sshll.u32 %s938_s15, 4  ;;  %s42_s16 = int_to_ptr.vmem [resolvable:$true] %s41_s16 }
   0x8   :  { %47 = dma.hbm_to_vmem [thread:$0]  %s40_s12, 512, %s42_s16, [#allocation6], %s936_s13, %s936_s13, %s937_s14  }
   0x9   :  { %929 = dma.done.wait [#allocation3], 512  }
   0xa   :  { %930 = vsyncadd [#allocation3], 4294966784 }
   0xb   :  { %931 = dma.done.wait [#allocation6], 512  }
   0xc   :  { %932 = vsyncadd [#allocation6], 4294966784  ;;  %v939_v0 = vmov 0   ;;  %v800_v1 = vld [vmem:[%s1499_s0 + $0x10] sm:$0xff]  ;;  %v81_v2 = vld [vmem:[%s1500_s1] sm:$0xff]  ;;  %s940_s21 = smov [#allocation7]  }
   0xd   :  { %852 = vset.pattern.permute.xlu2 %v939_v0  ;;  %851 = vset.pattern.permute.xlu1 %v939_v0  ;;  %v80_v3 = vld [vmem:[%s1499_s0] sm:$0xff]  ;;  %v801_v4 = vld [vmem:[%s1500_s1 + $0x10] sm:$0xff]  ;;  %v804_v5 = vld [vmem:[%s1500_s1 + $0x18] sm:$0xff]  ;;  %s783_s22 = sshll.u32 %s940_s21, 4  ;;  %s784_s22 = int_to_ptr.vmem [resolvable:$true] %s783_s22 }
   0xe   :  { %850 = vset.pattern.permute.xlu0 %v939_v0  ;;  %88 = vperm.xlu2 %852, %v81_v2   ;;  %v803_v6 = vld [vmem:[%s1499_s0 + $0x18] sm:$0xff]  ;;  %v798_v7 = vld [vmem:[%s1500_s1 + $0x8] sm:$0xff]  ;;  %v812_v10 = vld [vmem:[%s1499_s0 + $0x30] sm:$0xff] }
   0xf   :  { %156 = vperm.xlu0 %850, %v800_v1   ;;  %83 = vperm.xlu1 %851, %v80_v3   ;;  %v150_v8 = vadd.f32 %v798_v7, %v81_v2  ;;  %v797_v9 = vld [vmem:[%s1499_s0 + $0x8] sm:$0xff]  ;;  %v813_v13 = vld [vmem:[%s1500_s1 + $0x30] sm:$0xff]  ;;  %v815_v14 = vld [vmem:[%s1499_s0 + $0x38] sm:$0xff]  ;;  %v78_v2 = vlaneseq }
  0x10   :  { %v806_v15 = vld [vmem:[%s1499_s0 + $0x20] sm:$0xff]  ;;  %v1034_v18 = vld [vmem:[%s1501_s2 + $0x78] sm:$0xff]  ;;  %v1039_v19 = vld [vmem:[%s1501_s2 + $0x70] sm:$0xff] }
  0x11   :  { %v187_v11 = vadd.f32 %v801_v4, %v150_v8  ;;  %v807_v16 = vld [vmem:[%s1500_s1 + $0x20] sm:$0xff]  ;;  %v810_v20 = vld [vmem:[%s1500_s1 + $0x28] sm:$0xff]  ;;  %165 = vmatpush.msra.mxu2 %v1034_v18  ;;  %92 = vmatpush.msra.mxu0 %v1034_v18  ;;  %v816_v23 = vld [vmem:[%s1500_s1 + $0x38] sm:$0xff] }
  0x12   :  { %202 = vmatpush.msra.mxu3 %v1034_v18  ;;  %128 = vmatpush.msra.mxu1 %v1034_v18  ;;  %v809_v22 = vld [vmem:[%s1499_s0 + $0x28] sm:$0xff]  ;;  %v1066_v26 = vld [vmem:[%s1501_s2 + $0x60] sm:$0xff]  ;;  %v1074_v28 = vld [vmem:[%s1501_s2 + $0x58] sm:$0xff] }
  0x13   :  { %v224_v12 = vadd.f32 %v804_v5, %v187_v11  ;;  %166 = vmatpush.msra.mxu2 %v1039_v19  ;;  %93 = vmatpush.msra.mxu0 %v1039_v19  ;;  %v1061_v25 = vld [vmem:[%s1501_s2 + $0x68] sm:$0xff]  ;;  %v825_v29 = vld [vmem:[%s1500_s1 + $0x50] sm:$0xff]  ;;  %v819_v31 = vld [vmem:[%s1500_s1 + $0x40] sm:$0xff] }
  0x14   :  { %203 = vmatpush.msra.mxu3 %v1039_v19  ;;  %129 = vmatpush.msra.mxu1 %v1039_v19  ;;  %v824_v30 = vld [vmem:[%s1499_s0 + $0x50] sm:$0xff]  ;;  %v1103_v34 = vld [vmem:[%s1501_s2 + $0x48] sm:$0xff]  ;;  %v1113_v36 = vld [vmem:[%s1501_s2 + $0x40] sm:$0xff] }
  0x15   :  { %v261_v17 = vadd.f32 %v807_v16, %v224_v12  ;;  %167 = vmatpush.msra.mxu2 %v1061_v25  ;;  %94 = vmatpush.msra.mxu0 %v1061_v25  ;;  %v1095_v32 = vld [vmem:[%s1501_s2 + $0x50] sm:$0xff]  ;;  %v822_v35 = vld [vmem:[%s1500_s1 + $0x48] sm:$0xff]  ;;  %v1122_v38 = vld [vmem:[%s1501_s2 + $0x38] sm:$0xff] }
  0x16   :  { %198 = vperm.xlu2 %852, %v804_v5   ;;  %204 = vmatpush.msra.mxu3 %v1061_v25  ;;  %v818_v39 = vld [vmem:[%s1499_s0 + $0x40] sm:$0xff]  ;;  %v827_v40 = vld [vmem:[%s1499_s0 + $0x58] sm:$0xff]  ;;  %v1138_v42 = vld [vmem:[%s1501_s2 + $0x30] sm:$0xff] }
  0x17   :  { %161 = vperm.xlu0 %850, %v801_v4   ;;  %193 = vperm.xlu1 %851, %v803_v6   ;;  %v298_v21 = vadd.f32 %v810_v20, %v261_v17  ;;  %v1145_v43 = vld [vmem:[%s1501_s2 + $0x28] sm:$0xff]  ;;  %v828_v44 = vld [vmem:[%s1500_s1 + $0x58] sm:$0xff]  ;;  %v1156_v46 = vld [vmem:[%s1501_s2 + $0x20] sm:$0xff]  ;;  %v1296_v4 = vand.u32 127, %v78_v2 }
  0x18   :  { %130 = vmatpush.msra.mxu1 %v1061_v25  ;;  %168 = vmatpush.msra.mxu2 %v1066_v26  ;;  %v831_v47 = vld [vmem:[%s1500_s1 + $0x60] sm:$0xff]  ;;  %v821_v48 = vld [vmem:[%s1499_s0 + $0x48] sm:$0xff]  ;;  %v1174_v49 = vld [vmem:[%s1501_s2 + $0x18] sm:$0xff] }
  0x19   :  { %v335_v24 = vadd.f32 %v813_v13, %v298_v21  ;;  %95 = vmatpush.msra.mxu0 %v1066_v26  ;;  %205 = vmatpush.msra.mxu3 %v1066_v26  ;;  %v834_v51 = vld [vmem:[%s1500_s1 + $0x68] sm:$0xff]  ;;  %v1184_v52 = vld [vmem:[%s1501_s2 + $0x10] sm:$0xff]  ;;  %v1201_v55 = vld [vmem:[%s1501_s2] sm:$0xff] }
  0x1a   :  { %131 = vmatpush.msra.mxu1 %v1066_v26  ;;  %169 = vmatpush.msra.mxu2 %v1074_v28  ;;  %v1192_v53 = vld [vmem:[%s1501_s2 + $0x8] sm:$0xff]  ;;  %v836_v56 = vld [vmem:[%s1499_s0 + $0x70] sm:$0xff]  ;;  %v830_v57 = vld [vmem:[%s1499_s0 + $0x60] sm:$0xff] }
  0x1b   :  { %v372_v27 = vadd.f32 %v816_v23, %v335_v24  ;;  %96 = vmatpush.msra.mxu0 %v1074_v28  ;;  %206 = vmatpush.msra.mxu3 %v1074_v28  ;;  %v837_v58 = vld [vmem:[%s1500_s1 + $0x70] sm:$0xff]  ;;  %v840_v60 = vld [vmem:[%s1500_s1 + $0x78] sm:$0xff]  ;;  %v833_v0 = vld [vmem:[%s1499_s0 + $0x68] sm:$0xff] }
  0x1c   :  { %132 = vmatpush.msra.mxu1 %v1074_v28  ;;  %170 = vmatpush.msra.mxu2 %v1095_v32  ;;  %v839_v62 = vld [vmem:[%s1499_s0 + $0x78] sm:$0xff] }
  0x1d   :  { %v409_v33 = vadd.f32 %v819_v31, %v372_v27  ;;  %97 = vmatpush.msra.mxu0 %v1095_v32  ;;  %207 = vmatpush.msra.mxu3 %v1095_v32  ;;  %v748_v2 = vld [vmem:[%s1505_s6 + $0x58] sm:$0xff] }
  0x1e   :  { %304 = vperm.xlu2 %852, %v812_v10   ;;  %171 = vmatpush.msra.mxu2 %v1103_v34 }
  0x1f   :  { %119 = vperm.xlu0 %850, %v797_v9   ;;  %124 = vperm.xlu1 %851, %v798_v7   ;;  %v446_v37 = vadd.f32 %v822_v35, %v409_v33 }
  0x20   :  { %133 = vmatpush.msra.mxu1 %v1095_v32  ;;  %98 = vmatpush.msra.mxu0 %v1103_v34 }
  0x21   :  { %208 = vmatpush.msra.mxu3 %v1103_v34  ;;  %172 = vmatpush.msra.mxu2 %v1113_v36  ;;  %v483_v41 = vadd.f32 %v825_v29, %v446_v37 }
  0x22   :  { %134 = vmatpush.msra.mxu1 %v1103_v34  ;;  %99 = vmatpush.msra.mxu0 %v1113_v36 }
  0x23   :  { %209 = vmatpush.msra.mxu3 %v1113_v36  ;;  %173 = vmatpush.msra.mxu2 %v1122_v38  ;;  %v520_v45 = vadd.f32 %v828_v44, %v483_v41 }
  0x24   :  { %135 = vmatpush.msra.mxu1 %v1113_v36  ;;  %100 = vmatpush.msra.mxu0 %v1122_v38 }
  0x25   :  { %174 = vmatpush.msra.mxu2 %v1138_v42  ;;  %210 = vmatpush.msra.mxu3 %v1122_v38  ;;  %v557_v50 = vadd.f32 %v831_v47, %v520_v45 }
  0x26   :  { %341 = vperm.xlu2 %852, %v815_v14   ;;  %101 = vmatpush.msra.mxu0 %v1138_v42 }
  0x27   :  { %309 = vperm.xlu0 %850, %v813_v13   ;;  %230 = vperm.xlu1 %851, %v806_v15   ;;  %v594_v54 = vadd.f32 %v834_v51, %v557_v50 }
  0x28   :  { %136 = vmatpush.msra.mxu1 %v1122_v38  ;;  %175 = vmatpush.msra.mxu2 %v1145_v43 }
  0x29   :  { %211 = vmatpush.msra.mxu3 %v1138_v42  ;;  %102 = vmatpush.msra.mxu0 %v1145_v43  ;;  %v631_v59 = vadd.f32 %v837_v58, %v594_v54 }
  0x2a   :  { %137 = vmatpush.msra.mxu1 %v1138_v42  ;;  %176 = vmatpush.msra.mxu2 %v1156_v46 }
  0x2b   :  { %212 = vmatpush.msra.mxu3 %v1145_v43  ;;  %103 = vmatpush.msra.mxu0 %v1156_v46  ;;  %v668_v61 = vadd.f32 %v840_v60, %v631_v59  ;;  %v752_v59 = vld [vmem:[%s1505_s6 + $0x78] sm:$0xff] }
  0x2c   :  { %138 = vmatpush.msra.mxu1 %v1145_v43  ;;  %177 = vmatpush.msra.mxu2 %v1174_v49 }
  0x2d   :  { %213 = vmatpush.msra.mxu3 %v1156_v46  ;;  %104 = vmatpush.msra.mxu0 %v1174_v49  ;;  %855 = vrcp.f32 %v668_v61  ;;  %v750_v61 = vld [vmem:[%s1505_s6 + $0x68] sm:$0xff] }
  0x2e   :  { %267 = vperm.xlu2 %852, %v809_v22   ;;  %178 = vmatpush.msra.mxu2 %v1184_v52 }
  0x2f   :  { %235 = vperm.xlu0 %850, %v807_v16   ;;  %346 = vperm.xlu1 %851, %v816_v23  }
  0x30   :  { %139 = vmatpush.msra.mxu1 %v1156_v46  ;;  %214 = vmatpush.msra.mxu3 %v1174_v49 }
  0x31   :  { %105 = vmatpush.msra.mxu0 %v1184_v52  ;;  %179 = vmatpush.msra.mxu2 %v1192_v53 }
  0x32   :  { %140 = vmatpush.msra.mxu1 %v1174_v49  ;;  %215 = vmatpush.msra.mxu3 %v1184_v52 }
  0x33   :  { %106 = vmatpush.msra.mxu0 %v1192_v53  ;;  %180 = vmatpush.msra.mxu2 %v1201_v55  ;;  %v856_v63 = vpop.eup %855 }
  0x34   :  { %141 = vmatpush.msra.mxu1 %v1184_v52  ;;  %216 = vmatpush.msra.mxu3 %v1192_v53 }
  0x35   :  { %313 = vmatpush.msrb.mxu2 %v1034_v18  ;;  %107 = vmatpush.msra.mxu0 %v1201_v55 }
  0x36   :  { %457 = vperm.xlu2 %852, %v825_v29   ;;  %217 = vmatpush.msra.mxu3 %v1201_v55 }
  0x37   :  { %272 = vperm.xlu0 %850, %v810_v20   ;;  %452 = vperm.xlu1 %851, %v824_v30  }
  0x38   :  { %239 = vmatpush.msrb.mxu0 %v1034_v18  ;;  %314 = vmatpush.msrb.mxu2 %v1039_v19 }
  0x39   :  { %350 = vmatpush.msrb.mxu3 %v1034_v18  ;;  %142 = vmatpush.msra.mxu1 %v1192_v53 }
  0x3a   :  { %240 = vmatpush.msrb.mxu0 %v1039_v19  ;;  %315 = vmatpush.msrb.mxu2 %v1061_v25 }
  0x3b   :  { %351 = vmatpush.msrb.mxu3 %v1039_v19  ;;  %143 = vmatpush.msra.mxu1 %v1201_v55 }
  0x3c   :  { %241 = vmatpush.msrb.mxu0 %v1061_v25  ;;  %316 = vmatpush.msrb.mxu2 %v1066_v26 }
  0x3d   :  { %352 = vmatpush.msrb.mxu3 %v1061_v25  ;;  %276 = vmatpush.msrb.mxu1 %v1034_v18 }
  0x3e   :  { %383 = vperm.xlu2 %852, %v819_v31   ;;  %242 = vmatpush.msrb.mxu0 %v1066_v26 }
  0x3f   :  { %378 = vperm.xlu0 %850, %v818_v39   ;;  %489 = vperm.xlu1 %851, %v827_v40   ;;  %v679_v40 = vld [vmem:[#allocation2 + $0x18] sm:$0xff] }
  0x40   :  { %317 = vmatpush.msrb.mxu2 %v1074_v28  ;;  %353 = vmatpush.msrb.mxu3 %v1066_v26 }
  0x41   :  { %243 = vmatpush.msrb.mxu0 %v1074_v28  ;;  %277 = vmatpush.msrb.mxu1 %v1039_v19 }
  0x42   :  { %318 = vmatpush.msrb.mxu2 %v1095_v32  ;;  %354 = vmatpush.msrb.mxu3 %v1074_v28 }
  0x43   :  { %244 = vmatpush.msrb.mxu0 %v1095_v32  ;;  %278 = vmatpush.msrb.mxu1 %v1061_v25 }
  0x44   :  { %319 = vmatpush.msrb.mxu2 %v1103_v34  ;;  %355 = vmatpush.msrb.mxu3 %v1095_v32 }
  0x45   :  { %245 = vmatpush.msrb.mxu0 %v1103_v34  ;;  %279 = vmatpush.msrb.mxu1 %v1066_v26 }
  0x46   :  { %420 = vperm.xlu2 %852, %v822_v35   ;;  %320 = vmatpush.msrb.mxu2 %v1113_v36 }
  0x47   :  { %494 = vperm.xlu0 %850, %v828_v44   ;;  %415 = vperm.xlu1 %851, %v821_v48   ;;  %v678_v44 = vld [vmem:[#allocation2 + $0x10] sm:$0xff]  ;;  %v677_v48 = vld [vmem:[#allocation2 + $0x8] sm:$0xff] }
  0x48   :  { %356 = vmatpush.msrb.mxu3 %v1103_v34  ;;  %246 = vmatpush.msrb.mxu0 %v1113_v36 }
  0x49   :  { %321 = vmatpush.msrb.mxu2 %v1122_v38  ;;  %280 = vmatpush.msrb.mxu1 %v1074_v28 }
  0x4a   :  { %357 = vmatpush.msrb.mxu3 %v1113_v36  ;;  %247 = vmatpush.msrb.mxu0 %v1122_v38 }
  0x4b   :  { %322 = vmatpush.msrb.mxu2 %v1138_v42  ;;  %281 = vmatpush.msrb.mxu1 %v1095_v32 }
  0x4c   :  { %358 = vmatpush.msrb.mxu3 %v1122_v38  ;;  %248 = vmatpush.msrb.mxu0 %v1138_v42 }
  0x4d   :  { %323 = vmatpush.msrb.mxu2 %v1145_v43  ;;  %282 = vmatpush.msrb.mxu1 %v1103_v34 }
  0x4e   :  { %526 = vperm.xlu2 %852, %v830_v57   ;;  %359 = vmatpush.msrb.mxu3 %v1138_v42 }
  0x4f   :  { %600 = vperm.xlu0 %850, %v836_v56   ;;  %605 = vperm.xlu1 %851, %v837_v58   ;;  %v680_v56 = vld [vmem:[#allocation5] sm:$0xff] }
  0x50   :  { %249 = vmatpush.msrb.mxu0 %v1145_v43  ;;  %324 = vmatpush.msrb.mxu2 %v1156_v46 }
  0x51   :  { %360 = vmatpush.msrb.mxu3 %v1145_v43  ;;  %283 = vmatpush.msrb.mxu1 %v1113_v36 }
  0x52   :  { %250 = vmatpush.msrb.mxu0 %v1156_v46  ;;  %325 = vmatpush.msrb.mxu2 %v1174_v49 }
  0x53   :  { %361 = vmatpush.msrb.mxu3 %v1156_v46  ;;  %284 = vmatpush.msrb.mxu1 %v1122_v38 }
  0x54   :  { %251 = vmatpush.msrb.mxu0 %v1174_v49  ;;  %326 = vmatpush.msrb.mxu2 %v1184_v52 }
  0x55   :  { %362 = vmatpush.msrb.mxu3 %v1174_v49  ;;  %285 = vmatpush.msrb.mxu1 %v1138_v42 }
  0x56   :  { %642 = vperm.xlu2 %852, %v840_v60   ;;  %252 = vmatpush.msrb.mxu0 %v1184_v52  ;;  %v751_v60 = vld [vmem:[%s1505_s6 + $0x70] sm:$0xff] }
  0x57   :  { %637 = vperm.xlu0 %850, %v839_v62   ;;  %531 = vperm.xlu1 %851, %v831_v47   ;;  %v682_v47 = vld [vmem:[#allocation5 + $0x10] sm:$0xff] }
  0x58   :  { %327 = vmatpush.msrb.mxu2 %v1192_v53  ;;  %363 = vmatpush.msrb.mxu3 %v1184_v52 }
  0x59   :  { %286 = vmatpush.msrb.mxu1 %v1145_v43  ;;  %253 = vmatpush.msrb.mxu0 %v1192_v53 }
  0x5a   :  { %328 = vmatpush.msrb.mxu2 %v1201_v55  ;;  %364 = vmatpush.msrb.mxu3 %v1192_v53 }
  0x5b   :  { %287 = vmatpush.msrb.mxu1 %v1156_v46  ;;  %254 = vmatpush.msrb.mxu0 %v1201_v55 }
  0x5c   :  { %365 = vmatpush.msrb.mxu3 %v1201_v55 }
  0x5d   :  { %288 = vmatpush.msrb.mxu1 %v1174_v49 }
  0x5e   :  { %672 = vperm.xlu2 %852, %v856_v63  }
  0x5f   :  { %563 = vperm.xlu0 %850, %v833_v0   ;;  %568 = vperm.xlu1 %851, %v834_v51  }
  0x60   :  { %289 = vmatpush.msrb.mxu1 %v1184_v52 }
  0x62   :  { %290 = vmatpush.msrb.mxu1 %v1192_v53 }
  0x64   :  { %291 = vmatpush.msrb.mxu1 %v1201_v55 }
  0x68   :  { %v89_v1 = vpop.permute.xlu2 %88 }
  0x70   :  { %v199_v3 = vpop.permute.xlu2 %198 }
  0x78   :  { %v305_v7 = vpop.permute.xlu2 %304 }
  0x79   :  { %vm306_vm4 = vcmp.eq.s32.totalorder %v1296_v4, %v305_v7  ;;  %v747_v7 = vld [vmem:[%s1505_s6 + $0x50] sm:$0xff] }
  0x80   :  { %v342_v12 = vpop.permute.xlu2 %341 }
  0x81   :  { %v157_v5 = vpop.permute.xlu0 %156  ;;  %v84_v6 = vpop.permute.xlu1 %83  ;;  %vm343_vm6 = vcmp.eq.s32.totalorder %v1296_v4, %v342_v12 }
  0x82   :  { %vm85_vm0 = vcmp.eq.s32.totalorder %v1296_v4, %v84_v6  ;;  %vm158_vm1 = vcmp.eq.s32.totalorder %v1296_v4, %v157_v5 }
  0x83   :  { %796 = vmatmul.msk.f32.vlgmr.msra.gmra.mxu0 %vm85_vm0, %v89_v1  ;;  %v749_v1 = vld [vmem:[%s1505_s6 + $0x60] sm:$0xff]  ;;  %vm684_vm0 = vcmask 261120  }
  0x84   :  { %387 = vmatpush.msra.mxu0 %v1034_v18 }
  0x86   :  { %388 = vmatpush.msra.mxu0 %v1039_v19 }
  0x88   :  { %389 = vmatpush.msra.mxu0 %v1061_v25  ;;  %v268_v15 = vpop.permute.xlu2 %267 }
  0x89   :  { %v162_v8 = vpop.permute.xlu0 %161  ;;  %v194_v9 = vpop.permute.xlu1 %193  ;;  %vm269_vm7 = vcmp.eq.s32.totalorder %v1296_v4, %v268_v15  ;;  %v744_v15 = vld [vmem:[%s1505_s6 + $0x38] sm:$0xff] }
  0x8a   :  { %802 = vmatmul.msk.f32.vlgmr.msra.gmra.mxu2 %vm158_vm1, %v162_v8  ;;  %vm195_vm2 = vcmp.eq.s32.totalorder %v1296_v4, %v194_v9  ;;  %390 = vmatpush.msra.mxu0 %v1066_v26 }
  0x8b   :  { %461 = vmatpush.msra.mxu2 %v1034_v18  ;;  %805 = vmatmul.msk.f32.vlgmr.msra.gmra.mxu3 %vm195_vm2, %v199_v3 }
  0x8c   :  { %498 = vmatpush.msra.mxu3 %v1034_v18  ;;  %391 = vmatpush.msra.mxu0 %v1074_v28 }
  0x8d   :  { %462 = vmatpush.msra.mxu2 %v1039_v19 }
  0x8e   :  { %499 = vmatpush.msra.mxu3 %v1039_v19  ;;  %392 = vmatpush.msra.mxu0 %v1095_v32 }
  0x8f   :  { %463 = vmatpush.msra.mxu2 %v1061_v25 }
  0x90   :  { %500 = vmatpush.msra.mxu3 %v1061_v25  ;;  %393 = vmatpush.msra.mxu0 %v1103_v34  ;;  %v458_v20 = vpop.permute.xlu2 %457 }
  0x91   :  { %464 = vmatpush.msra.mxu2 %v1066_v26  ;;  %v120_v10 = vpop.permute.xlu0 %119  ;;  %v125_v11 = vpop.permute.xlu1 %124 }
  0x92   :  { %vm121_vm3 = vcmp.eq.s32.totalorder %v1296_v4, %v120_v10  ;;  %501 = vmatpush.msra.mxu3 %v1066_v26  ;;  %394 = vmatpush.msra.mxu0 %v1113_v36 }
  0x93   :  { %465 = vmatpush.msra.mxu2 %v1074_v28  ;;  %799 = vmatmul.msk.f32.vlgmr.msra.gmra.mxu1 %vm121_vm3, %v125_v11  ;;  %v746_v11 = vld [vmem:[%s1505_s6 + $0x48] sm:$0xff] }
  0x94   :  { %424 = vmatpush.msra.mxu1 %v1034_v18  ;;  %502 = vmatpush.msra.mxu3 %v1074_v28 }
  0x95   :  { %466 = vmatpush.msra.mxu2 %v1095_v32  ;;  %395 = vmatpush.msra.mxu0 %v1122_v38 }
  0x96   :  { %425 = vmatpush.msra.mxu1 %v1039_v19  ;;  %503 = vmatpush.msra.mxu3 %v1095_v32 }
  0x97   :  { %467 = vmatpush.msra.mxu2 %v1103_v34  ;;  %396 = vmatpush.msra.mxu0 %v1138_v42 }
  0x98   :  { %426 = vmatpush.msra.mxu1 %v1061_v25  ;;  %504 = vmatpush.msra.mxu3 %v1103_v34  ;;  %v384_v23 = vpop.permute.xlu2 %383 }
  0x99   :  { %468 = vmatpush.msra.mxu2 %v1113_v36  ;;  %v310_v13 = vpop.permute.xlu0 %309  ;;  %v231_v14 = vpop.permute.xlu1 %230  ;;  %397 = vmatpush.msra.mxu0 %v1145_v43 }
  0x9a   :  { %814 = vmatmul.msk.f32.vlgmr.msrb.gmra.mxu2 %vm306_vm4, %v310_v13  ;;  %427 = vmatpush.msra.mxu1 %v1066_v26  ;;  %vm232_vm5 = vcmp.eq.s32.totalorder %v1296_v4, %v231_v14  ;;  %v745_v14 = vld [vmem:[%s1505_s6 + $0x40] sm:$0xff] }
  0x9b   :  { %469 = vmatpush.msra.mxu2 %v1122_v38  ;;  %505 = vmatpush.msra.mxu3 %v1113_v36 }
  0x9c   :  { %428 = vmatpush.msra.mxu1 %v1074_v28  ;;  %398 = vmatpush.msra.mxu0 %v1156_v46 }
  0x9d   :  { %470 = vmatpush.msra.mxu2 %v1138_v42  ;;  %506 = vmatpush.msra.mxu3 %v1122_v38 }
  0x9e   :  { %429 = vmatpush.msra.mxu1 %v1095_v32  ;;  %399 = vmatpush.msra.mxu0 %v1174_v49 }
  0x9f   :  { %471 = vmatpush.msra.mxu2 %v1145_v43  ;;  %507 = vmatpush.msra.mxu3 %v1138_v42 }
  0xa0   :  { %430 = vmatpush.msra.mxu1 %v1103_v34  ;;  %400 = vmatpush.msra.mxu0 %v1184_v52  ;;  %v421_v31 = vpop.permute.xlu2 %420 }
  0xa1   :  { %472 = vmatpush.msra.mxu2 %v1156_v46  ;;  %v236_v16 = vpop.permute.xlu0 %235  ;;  %v347_v17 = vpop.permute.xlu1 %346  ;;  %508 = vmatpush.msra.mxu3 %v1145_v43 }
  0xa2   :  { %808 = vmatmul.msk.f32.vlgmr.msrb.gmra.mxu0 %vm232_vm5, %v236_v16  ;;  %817 = vmatmul.msk.f32.vlgmr.msrb.gmra.mxu3 %vm343_vm6, %v347_v17 }
  0xa3   :  { %473 = vmatpush.msra.mxu2 %v1174_v49  ;;  %431 = vmatpush.msra.mxu1 %v1113_v36 }
  0xa4   :  { %509 = vmatpush.msra.mxu3 %v1156_v46  ;;  %401 = vmatpush.msra.mxu0 %v1192_v53 }
  0xa5   :  { %474 = vmatpush.msra.mxu2 %v1184_v52  ;;  %432 = vmatpush.msra.mxu1 %v1122_v38 }
  0xa6   :  { %510 = vmatpush.msra.mxu3 %v1174_v49  ;;  %402 = vmatpush.msra.mxu0 %v1201_v55 }
  0xa7   :  { %475 = vmatpush.msra.mxu2 %v1192_v53  ;;  %433 = vmatpush.msra.mxu1 %v1138_v42 }
  0xa8   :  { %511 = vmatpush.msra.mxu3 %v1184_v52  ;;  %535 = vmatpush.msrb.mxu0 %v1034_v18 }
  0xa9   :  { %476 = vmatpush.msra.mxu2 %v1201_v55  ;;  %v273_v21 = vpop.permute.xlu0 %272  ;;  %v453_v22 = vpop.permute.xlu1 %452  ;;  %434 = vmatpush.msra.mxu1 %v1145_v43 }
  0xaa   :  { %512 = vmatpush.msra.mxu3 %v1192_v53  ;;  %vm454_vm8 = vcmp.eq.s32.totalorder %v1296_v4, %v453_v22  ;;  %811 = vmatmul.msk.f32.vlgmr.msrb.gmra.mxu1 %vm269_vm7, %v273_v21  ;;  %v743_v21 = vld [vmem:[%s1505_s6 + $0x30] sm:$0xff] }
  0xab   :  { %609 = vmatpush.msrb.mxu2 %v1034_v18  ;;  %435 = vmatpush.msra.mxu1 %v1156_v46 }
  0xac   :  { %826 = vmatmul.msk.f32.vlgmr.msra.gmra.mxu2 %vm454_vm8, %v458_v20  ;;  %513 = vmatpush.msra.mxu3 %v1201_v55 }
  0xad   :  { %610 = vmatpush.msrb.mxu2 %v1039_v19  ;;  %436 = vmatpush.msra.mxu1 %v1174_v49 }
  0xae   :  { %646 = vmatpush.msrb.mxu3 %v1034_v18  ;;  %536 = vmatpush.msrb.mxu0 %v1039_v19 }
  0xaf   :  { %611 = vmatpush.msrb.mxu2 %v1061_v25  ;;  %437 = vmatpush.msra.mxu1 %v1184_v52 }
  0xb0   :  { %647 = vmatpush.msrb.mxu3 %v1039_v19  ;;  %537 = vmatpush.msrb.mxu0 %v1061_v25 }
  0xb1   :  { %v379_v24 = vpop.permute.xlu0 %378  ;;  %612 = vmatpush.msrb.mxu2 %v1066_v26  ;;  %v490_v27 = vpop.permute.xlu1 %489  ;;  %438 = vmatpush.msra.mxu1 %v1192_v53 }
  0xb2   :  { %648 = vmatpush.msrb.mxu3 %v1061_v25  ;;  %vm380_vm9 = vcmp.eq.s32.totalorder %v1296_v4, %v379_v24  ;;  %538 = vmatpush.msrb.mxu0 %v1066_v26  ;;  %vm491_vm11 = vcmp.eq.s32.totalorder %v1296_v4, %v490_v27 }
  0xb3   :  { %613 = vmatpush.msrb.mxu2 %v1074_v28  ;;  %820 = vmatmul.msk.f32.vlgmr.msra.gmra.mxu0 %vm380_vm9, %v384_v23  ;;  %v742_v23 = vld [vmem:[%s1505_s6 + $0x28] sm:$0xff] }
  0xb4   :  { %649 = vmatpush.msrb.mxu3 %v1066_v26  ;;  %439 = vmatpush.msra.mxu1 %v1201_v55 }
  0xb5   :  { %539 = vmatpush.msrb.mxu0 %v1074_v28  ;;  %614 = vmatpush.msrb.mxu2 %v1095_v32 }
  0xb6   :  { %572 = vmatpush.msrb.mxu1 %v1034_v18  ;;  %650 = vmatpush.msrb.mxu3 %v1074_v28 }
  0xb7   :  { %540 = vmatpush.msrb.mxu0 %v1095_v32  ;;  %615 = vmatpush.msrb.mxu2 %v1103_v34 }
  0xb8   :  { %573 = vmatpush.msrb.mxu1 %v1039_v19  ;;  %651 = vmatpush.msrb.mxu3 %v1095_v32 }
  0xb9   :  { %v495_v29 = vpop.permute.xlu0 %494  ;;  %541 = vmatpush.msrb.mxu0 %v1103_v34  ;;  %616 = vmatpush.msrb.mxu2 %v1113_v36  ;;  %v416_v30 = vpop.permute.xlu1 %415 }
  0xba   :  { %574 = vmatpush.msrb.mxu1 %v1061_v25  ;;  %652 = vmatpush.msrb.mxu3 %v1103_v34  ;;  %vm417_vm10 = vcmp.eq.s32.totalorder %v1296_v4, %v416_v30  ;;  %v527_v25 = vpop.permute.xlu2 %526 }
  0xbb   :  { %542 = vmatpush.msrb.mxu0 %v1113_v36  ;;  %617 = vmatpush.msrb.mxu2 %v1122_v38  ;;  %vm528_vm13 = vcmp.eq.s32.totalorder %v1296_v4, %v527_v25 }
  0xbc   :  { %829 = vmatmul.msk.f32.vlgmr.msra.gmra.mxu3 %vm491_vm11, %v495_v29  ;;  %575 = vmatpush.msrb.mxu1 %v1066_v26 }
  0xbd   :  { %653 = vmatpush.msrb.mxu3 %v1113_v36  ;;  %823 = vmatmul.msk.f32.vlgmr.msra.gmra.mxu1 %vm417_vm10, %v421_v31 }
  0xbe   :  { %543 = vmatpush.msrb.mxu0 %v1122_v38  ;;  %618 = vmatpush.msrb.mxu2 %v1138_v42 }
  0xbf   :  { %576 = vmatpush.msrb.mxu1 %v1074_v28  ;;  %654 = vmatpush.msrb.mxu3 %v1122_v38 }
  0xc0   :  { %544 = vmatpush.msrb.mxu0 %v1138_v42  ;;  %619 = vmatpush.msrb.mxu2 %v1145_v43 }
  0xc1   :  { %v601_v18 = vpop.permute.xlu0 %600  ;;  %577 = vmatpush.msrb.mxu1 %v1095_v32  ;;  %655 = vmatpush.msrb.mxu3 %v1138_v42  ;;  %v606_v19 = vpop.permute.xlu1 %605 }
  0xc2   :  { %545 = vmatpush.msrb.mxu0 %v1145_v43  ;;  %620 = vmatpush.msrb.mxu2 %v1156_v46  ;;  %vm602_vm12 = vcmp.eq.s32.totalorder %v1296_v4, %v601_v18  ;;  %v643_v32 = vpop.permute.xlu2 %642 }
  0xc3   :  { %578 = vmatpush.msrb.mxu1 %v1103_v34  ;;  %656 = vmatpush.msrb.mxu3 %v1145_v43 }
  0xc4   :  { %546 = vmatpush.msrb.mxu0 %v1156_v46  ;;  %621 = vmatpush.msrb.mxu2 %v1174_v49 }
  0xc5   :  { %579 = vmatpush.msrb.mxu1 %v1113_v36  ;;  %657 = vmatpush.msrb.mxu3 %v1156_v46 }
  0xc6   :  { %547 = vmatpush.msrb.mxu0 %v1174_v49  ;;  %622 = vmatpush.msrb.mxu2 %v1184_v52 }
  0xc7   :  { %580 = vmatpush.msrb.mxu1 %v1122_v38  ;;  %658 = vmatpush.msrb.mxu3 %v1174_v49 }
  0xc8   :  { %548 = vmatpush.msrb.mxu0 %v1184_v52  ;;  %623 = vmatpush.msrb.mxu2 %v1192_v53 }
  0xc9   :  { %v638_v26 = vpop.permute.xlu0 %637  ;;  %581 = vmatpush.msrb.mxu1 %v1138_v42  ;;  %659 = vmatpush.msrb.mxu3 %v1184_v52  ;;  %v532_v28 = vpop.permute.xlu1 %531 }
  0xca   :  { %549 = vmatpush.msrb.mxu0 %v1192_v53  ;;  %624 = vmatpush.msrb.mxu2 %v1201_v55  ;;  %vm639_vm14 = vcmp.eq.s32.totalorder %v1296_v4, %v638_v26 }
  0xcb   :  { %582 = vmatpush.msrb.mxu1 %v1145_v43  ;;  %838 = vmatmul.msk.f32.vlgmr.msrb.gmra.mxu2 %vm602_vm12, %v606_v19  ;;  %v683_v43 = vld [vmem:[#allocation5 + $0x18] sm:$0xff] }
  0xcc   :  { %660 = vmatpush.msrb.mxu3 %v1192_v53  ;;  %550 = vmatpush.msrb.mxu0 %v1201_v55 }
  0xcd   :  { %832 = vmatmul.msk.f32.vlgmr.msrb.gmra.mxu0 %vm528_vm13, %v532_v28  ;;  %583 = vmatpush.msrb.mxu1 %v1156_v46 }
  0xce   :  { %661 = vmatpush.msrb.mxu3 %v1201_v55  ;;  %700 = vmatpush.msra.mxu0 %v683_v43  ;;  %v853_v43 = vld [vmem:[%s1504_s5] ss:$0 sm:$0xff] }
  0xcf   :  { %841 = vmatmul.msk.f32.vlgmr.msrb.gmra.mxu3 %vm639_vm14, %v643_v32  ;;  %584 = vmatpush.msrb.mxu1 %v1174_v49 }
  0xd0   :  { %701 = vmatpush.msra.mxu0 %v682_v47  ;;  %757 = vmatpush.msra.mxu2 %v752_v59 }
  0xd1   :  { %v564_v33 = vpop.permute.xlu0 %563  ;;  %585 = vmatpush.msrb.mxu1 %v1184_v52  ;;  %v569_v34 = vpop.permute.xlu1 %568  ;;  %v681_v52 = vld [vmem:[#allocation5 + $0x8] sm:$0xff] }
  0xd2   :  { %vm565_vm15 = vcmp.eq.s32.totalorder %v1296_v4, %v564_v33  ;;  %702 = vmatpush.msra.mxu0 %v681_v52  ;;  %758 = vmatpush.msra.mxu2 %v751_v60 }
  0xd3   :  { %586 = vmatpush.msrb.mxu1 %v1192_v53  ;;  %v676_v53 = vld [vmem:[#allocation2] sm:$0xff] }
  0xd4   :  { %703 = vmatpush.msra.mxu0 %v680_v56  ;;  %759 = vmatpush.msra.mxu2 %v750_v61 }
  0xd5   :  { %587 = vmatpush.msrb.mxu1 %v1201_v55 }
  0xd6   :  { %835 = vmatmul.msk.f32.vlgmr.msrb.gmra.mxu1 %vm565_vm15, %v569_v34  ;;  %760 = vmatpush.msra.mxu2 %v749_v1 }
  0xd7   :  { %723 = vmatpush.msra.mxu1 %v679_v40  ;;  %v739_v40 = vld [vmem:[%s1505_s6 + $0x10] sm:$0xff] }
  0xd8   :  { %761 = vmatpush.msra.mxu2 %v748_v2 }
  0xd9   :  { %724 = vmatpush.msra.mxu1 %v678_v44 }
  0xda   :  { %762 = vmatpush.msra.mxu2 %v747_v7 }
  0xdb   :  { %725 = vmatpush.msra.mxu1 %v677_v48 }
  0xdc   :  { %763 = vmatpush.msra.mxu2 %v746_v11 }
  0xdd   :  { %726 = vmatpush.msra.mxu1 %v676_v53 }
  0xde   :  { %764 = vmatpush.msra.mxu2 %v745_v14 }
  0xe0   :  { %765 = vmatpush.msra.mxu2 %v744_v15 }
  0xe2   :  { %766 = vmatpush.msra.mxu2 %v743_v21 }
  0xe4   :  { %767 = vmatpush.msra.mxu2 %v742_v23 }
 0x100   :  { %v109_v36 = vpop.f32.mrf.mxu0 }
 0x10d   :  { %v182_v39 = vpop.f32.mrf.mxu2 }
 0x10e   :  { %v219_v45 = vpop.f32.mrf.mxu3 }
 0x110   :  { %v145_v35 = vpop.f32.mrf.mxu1 }
 0x111   :  { %v148_v37 = vmax.f32 %v109_v36, %v145_v35  ;;  %v149_v38 = vadd.f32 %v145_v35, %v109_v36  ;;  %v673_v36 = vpop.permute.xlu2 %672 }
 0x113   :  { %v185_v41 = vmax.f32 %v148_v37, %v182_v39  ;;  %v186_v42 = vadd.f32 %v182_v39, %v149_v38  ;;  %v741_v38 = vld [vmem:[%s1505_s6 + $0x20] sm:$0xff]  ;;  %v740_v39 = vld [vmem:[%s1505_s6 + $0x18] sm:$0xff] }
 0x114   :  { %768 = vmatpush.msra.mxu2 %v741_v38 }
 0x115   :  { %v222_v49 = vmax.f32 %v185_v41, %v219_v45  ;;  %v223_v50 = vadd.f32 %v219_v45, %v186_v42  ;;  %v738_v41 = vld [vmem:[%s1505_s6 + $0x8] sm:$0xff]  ;;  %v737_v42 = vld [vmem:[%s1505_s6] sm:$0xff]  ;;  %s785_s6 = sshll.u32 %s1507_s8, 4  ;;  %s786_s6 = int_to_ptr.hbm [resolvable:$true] %s785_s6 }
 0x116   :  { %769 = vmatpush.msra.mxu2 %v740_v39 }
 0x118   :  { %770 = vmatpush.msra.mxu2 %v739_v40 }
 0x11a   :  { %771 = vmatpush.msra.mxu2 %v738_v41 }
 0x11c   :  { %772 = vmatpush.msra.mxu2 %v737_v42 }
 0x11d   :  { %v330_v62 = vpop.f32.mrf.mxu2 }
 0x11f   :  { %v256_v46 = vpop.f32.mrf.mxu0 }
 0x120   :  { %v259_v54 = vmax.f32 %v222_v49, %v256_v46  ;;  %v260_v55 = vadd.f32 %v256_v46, %v223_v50  ;;  %v854_v49 = vld [vmem:[%s1506_s7] ss:$0 sm:$0xff] }
 0x125   :  { %v367_v3 = vpop.f32.mrf.mxu3 }
 0x127   :  { %v293_v51 = vpop.f32.mrf.mxu1 }
 0x128   :  { %v296_v57 = vmax.f32 %v259_v54, %v293_v51  ;;  %v297_v58 = vadd.f32 %v293_v51, %v260_v55 }
 0x12a   :  { %v333_v63 = vmax.f32 %v296_v57, %v330_v62  ;;  %v334_v0 = vadd.f32 %v330_v62, %v297_v58 }
 0x12c   :  { %v370_v5 = vmax.f32 %v333_v63, %v367_v3  ;;  %v371_v6 = vadd.f32 %v367_v3, %v334_v0 }
 0x12f   :  { %v478_v16 = vpop.f32.mrf.mxu2 }
 0x130   :  { %v404_v4 = vpop.f32.mrf.mxu0 }
 0x131   :  { %v407_v9 = vmax.f32 %v370_v5, %v404_v4  ;;  %v408_v10 = vadd.f32 %v404_v4, %v371_v6 }
 0x13a   :  { %v441_v8 = vpop.f32.mrf.mxu1 }
 0x13b   :  { %v444_v12 = vmax.f32 %v407_v9, %v441_v8  ;;  %v445_v13 = vadd.f32 %v441_v8, %v408_v10 }
 0x13d   :  { %v481_v17 = vmax.f32 %v444_v12, %v478_v16  ;;  %v482_v20 = vadd.f32 %v478_v16, %v445_v13 }
 0x13f   :  { %v515_v22 = vpop.f32.mrf.mxu3 }
 0x140   :  { %v518_v27 = vmax.f32 %v481_v17, %v515_v22  ;;  %v519_v29 = vadd.f32 %v515_v22, %v482_v20 }
 0x14a   :  { %v552_v24 = vpop.f32.mrf.mxu0 }
 0x14b   :  { %v555_v30 = vmax.f32 %v518_v27, %v552_v24  ;;  %v556_v31 = vadd.f32 %v552_v24, %v519_v29 }
 0x14e   :  { %v626_v26 = vpop.f32.mrf.mxu2 }
 0x152   :  { %v663_v33 = vpop.f32.mrf.mxu3 }
 0x153   :  { %v589_v18 = vpop.f32.mrf.mxu1 }
 0x154   :  { %v592_v19 = vmax.f32 %v555_v30, %v589_v18  ;;  %v593_v25 = vadd.f32 %v589_v18, %v556_v31 }
 0x156   :  { %v629_v28 = vmax.f32 %v592_v19, %v626_v26  ;;  %v630_v32 = vadd.f32 %v626_v26, %v593_v25 }
 0x158   :  { %v666_v34 = vmax.f32 %v629_v28, %v663_v33  ;;  %v667_v35 = vadd.f32 %v663_v33, %v630_v32 }
 0x15a   :  { %v675_v37 = vmul.f32 %v673_v36, %v667_v35  ;;  %843 = vmatmul.msk.f32.vlgmr.msra.gmra.mxu1 %vm684_vm0, %v666_v34 }
 0x15c   :  { %842 = vmatmul.msk.f32.vlgmr.msra.gmra.mxu0 %vm684_vm0, %v675_v37 }
 0x1d7   :  { %v728_v44 = vpop.f32.mrf.mxu1 }
 0x1d9   :  { %v705_v45 = vpop.f32.mrf.mxu0 }
 0x1da   :  { %v729_v46 = vadd.f32 %v728_v44, %v705_v45 }
 0x1dc   :  { %v735_v47 = vadd.f32 %v853_v43, %v729_v46 }
 0x1de   :  { %v736_v48 = vmax.f32 %v735_v47, 0.0 }
 0x1e0   :  { %773 = vmatmul.f32.vlgmr.msra.gmra.mxu2 %v736_v48 }
 0x263   :  { %v774_v50 = vpop.f32.mrf.mxu2 }
 0x264   :  { %v775_v51 = vadd.f32 %v854_v49, %v774_v50 }
 0x266   :  { %777 = vst [vmem:[#allocation7] sm:$0xff] %v775_v51 }
 0x267   :  { %788 = dma.vmem_to_hbm [thread:$0]  %s784_s22, 128, %s786_s6, [#allocation4]  }
 0x268   :  { %933 = dma.done.wait [#allocation4], 128  }
 0x269   :  { %934 = vsyncadd [#allocation4], 4294967168 }
 0x26a   :  { %793 = vsyncpa [#allocation3], 1 }
 0x26b   :  { %794 = vsyncpa [#allocation6], 1 }
 0x26c   :  { %795 = vsyncpa [#allocation4], 1 }

</bundles_post_ra>
